<compile_context>
chip_gen: v5e
topology: v5e:2x2
jax: 0.10.0
libtpu: 0.0.40
codegen_flags: <defaults>
</compile_context>

<pallas_src>
import functools

import jax
import jax.numpy as jnp
from jax.experimental import pallas as pl
from jax.experimental.pallas import tpu as pltpu

C_PAD = 128                       # lane-dense channel width (all feature dims)
_VMEM_LIMIT = 32 * 1024 * 1024    # explicit scoped-VMEM budget (safe v5e/v6e/v7x)


def _round_up(x, m):
    return ((x + m - 1) // m) * m


def _pick_tiles(n):
    """Row-block (tm) / contraction (tk) tiles for the A_hat matmuls.

    Sized so a (tm, tk) bf16 A-tile + (tk, 128) bf16 XW-tile, double-buffered,
    plus the (tm, 128) f32 accumulator stay far below v7x's 64 MiB VMEM and the
    32 MiB scoped limit, while tiles are large enough (>=128 KiB) to sit near
    the HBM roofline.
    """
    tm = 256 if n > 256 else 128
    tk = 512 if n > 512 else tm
    n_pad = _round_up(n, max(tm, tk))
    return tm, tk, n_pad


# --------------------------- feature transform (layer 1) --------------------
def _xw_kernel(x_ref, w_ref, o_ref):
    # (tm, 128) @ (128, 128): computed once per node row-block (not per k-tile)
    o_ref[...] = jnp.dot(x_ref[...], w_ref[...],
                         preferred_element_type=jnp.float32).astype(o_ref.dtype)


def _feature_transform(x_bf16, w_bf16, *, tm):
    n_pad = x_bf16.shape[0]
    return pl.pallas_call(
        _xw_kernel,
        out_shape=jax.ShapeDtypeStruct((n_pad, C_PAD), jnp.bfloat16),
        grid_spec=pltpu.PrefetchScalarGridSpec(
            num_scalar_prefetch=0,
            grid=(n_pad // tm,),
            in_specs=[pl.BlockSpec((tm, C_PAD), lambda i: (i, 0)),
                      pl.BlockSpec((C_PAD, C_PAD), lambda i: (0, 0))],
            out_specs=pl.BlockSpec((tm, C_PAD), lambda i: (i, 0)),
        ),
        compiler_params=pltpu.CompilerParams(
            dimension_semantics=("parallel",),
            vmem_limit_bytes=_VMEM_LIMIT),
    )(x_bf16, w_bf16)


# ------------- A_hat aggregation (layer 1) + fused H1@W2 projection ----------
def _agg_kernel(a_ref, xw_ref, b_ref, w2_ref, o_ref, acc_ref):
    k = pl.program_id(1)

    @pl.when(k == 0)
    def _():
        acc_ref[...] = jnp.zeros_like(acc_ref)

    acc_ref[...] += jnp.dot(a_ref[...], xw_ref[...],
                            preferred_element_type=jnp.float32)

    @pl.when(k == pl.num_programs(1) - 1)
    def _():
        # H1 = relu(A_hat @ XW1 + b1) for this row block, then project straight
        # through W2 so H1 never touches HBM.
        h1 = jnp.maximum(acc_ref[...] + b_ref[...], 0.0).astype(jnp.bfloat16)
        o_ref[...] = jnp.dot(h1, w2_ref[...],
                             preferred_element_type=jnp.float32
                             ).astype(o_ref.dtype)


def _aggregate_l1(a_bf16, xw1_bf16, b1_f32, w2_bf16, *, tm, tk):
    n_pad = a_bf16.shape[0]
    flops = 2 * n_pad * n_pad * C_PAD + 2 * n_pad * C_PAD * C_PAD
    bytes_accessed = (a_bf16.size * 2 + xw1_bf16.size * 2
                      + w2_bf16.size * 2 + n_pad * C_PAD * 2)
    return pl.pallas_call(
        _agg_kernel,
        out_shape=jax.ShapeDtypeStruct((n_pad, C_PAD), jnp.bfloat16),
        grid_spec=pltpu.PrefetchScalarGridSpec(
            num_scalar_prefetch=0,
            grid=(n_pad // tm, n_pad // tk),
            in_specs=[pl.BlockSpec((tm, tk), lambda i, k: (i, k)),
                      pl.BlockSpec((tk, C_PAD), lambda i, k: (k, 0)),
                      pl.BlockSpec((1, C_PAD), lambda i, k: (0, 0)),
                      pl.BlockSpec((C_PAD, C_PAD), lambda i, k: (0, 0))],
            out_specs=pl.BlockSpec((tm, C_PAD), lambda i, k: (i, 0)),
            scratch_shapes=[pltpu.VMEM((tm, C_PAD), jnp.float32)]),
        compiler_params=pltpu.CompilerParams(
            dimension_semantics=("parallel", "arbitrary"),
            vmem_limit_bytes=_VMEM_LIMIT),
        cost_estimate=pl.CostEstimate(flops=flops, transcendentals=0,
                                      bytes_accessed=bytes_accessed),
    )(a_bf16, xw1_bf16, b1_f32, w2_bf16)


# ---------------- A_hat aggregation + fused mean-pool (layer 2) -------------
def _agg_pool_kernel(a_ref, xw_ref, b_ref, pool_ref, o_ref, acc_ref):
    k = pl.program_id(1)

    @pl.when(k == 0)
    def _():
        acc_ref[...] = jnp.zeros_like(acc_ref)

    acc_ref[...] += jnp.dot(a_ref[...], xw_ref[...],
                            preferred_element_type=jnp.float32)

    @pl.when(k == pl.num_programs(1) - 1)
    def _():
        h2 = acc_ref[...] + b_ref[...]                      # (tm, 128) f32
        # fused global_mean_pool: this row block's contribution to the pooled
        # sum; H2 is never written back to HBM.
        o_ref[...] = jnp.dot(pool_ref[...], h2,
                             preferred_element_type=jnp.float32)


def _aggregate_pool(a_bf16, xw_bf16, b_f32, pool_f32, *, tm, tk, b_pad):
    n_pad = a_bf16.shape[0]
    nb = n_pad // tm
    flops = 2 * n_pad * n_pad * C_PAD + 2 * n_pad * b_pad * C_PAD
    bytes_accessed = (a_bf16.size * 2 + xw_bf16.size * 2 + pool_f32.size * 4
                      + nb * b_pad * C_PAD * 4)
    return pl.pallas_call(
        _agg_pool_kernel,
        out_shape=jax.ShapeDtypeStruct((nb, b_pad, C_PAD), jnp.float32),
        grid_spec=pltpu.PrefetchScalarGridSpec(
            num_scalar_prefetch=0,
            grid=(nb, n_pad // tk),
            in_specs=[pl.BlockSpec((tm, tk), lambda i, k: (i, k)),
                      pl.BlockSpec((tk, C_PAD), lambda i, k: (k, 0)),
                      pl.BlockSpec((1, C_PAD), lambda i, k: (0, 0)),
                      pl.BlockSpec((b_pad, tm), lambda i, k: (0, i))],
            out_specs=pl.BlockSpec((None, b_pad, C_PAD), lambda i, k: (i, 0, 0)),
            scratch_shapes=[pltpu.VMEM((tm, C_PAD), jnp.float32)]),
        compiler_params=pltpu.CompilerParams(
            dimension_semantics=("parallel", "arbitrary"),
            vmem_limit_bytes=_VMEM_LIMIT),
        cost_estimate=pl.CostEstimate(flops=flops, transcendentals=0,
                                      bytes_accessed=bytes_accessed),
    )(a_bf16, xw_bf16, b_f32, pool_f32)


# ---------------------- epilogue: reduce + classifier ------------------------
def _classifier_kernel(part_ref, wc_ref, bc_ref, o_ref):
    pooled = jnp.sum(part_ref[...], axis=0)                 # (b_pad, 128)
    o_ref[...] = jnp.dot(pooled, wc_ref[...],
                         preferred_element_type=jnp.float32) + bc_ref[...]


def _classifier(partials, wc_pad, bc_pad, *, b_pad):
    vmem = pl.BlockSpec(memory_space=pltpu.MemorySpace.VMEM)
    return pl.pallas_call(
        _classifier_kernel,
        out_shape=jax.ShapeDtypeStruct((b_pad, C_PAD), jnp.float32),
        in_specs=[vmem, vmem, vmem],
        out_specs=vmem,
        compiler_params=pltpu.CompilerParams(vmem_limit_bytes=_VMEM_LIMIT),
    )(partials, wc_pad, bc_pad)


# ------------------------------ JAX glue -------------------------------------
def build_norm_adj(edge_index, num_nodes):
    """Dense D^{-1/2}(A+I)D^{-1/2} matching PyG GCNConv's gcn_norm.

    Duplicate (src,dst) edges accumulate multiplicity (message-passing sum,
    same as PyG's scatter-add).  Self-loops are only added for nodes that do
    not already have one (add_remaining_self_loops semantics).
    """
    src, dst = edge_index[0], edge_index[1]
    a = jnp.zeros((num_nodes, num_nodes), jnp.float32)
    a = a.at[dst, src].add(1.0)                      # messages flow src -> dst
    diag = jnp.diagonal(a)
    a = a + jnp.diag(jnp.where(diag > 0.0, 0.0, 1.0))
    deg = a.sum(axis=1)
    dinv = jnp.where(deg > 0.0, jax.lax.rsqrt(deg), 0.0)
    return dinv[:, None] * a * dinv[None, :]


def build_mean_pool(batch, num_graphs, num_nodes):
    """pool[b, i] = 1/count_b if batch[i] == b else 0."""
    onehot = (batch[None, :] == jnp.arange(num_graphs)[:, None]).astype(jnp.float32)
    counts = jnp.maximum(onehot.sum(axis=1, keepdims=True), 1.0)
    return onehot / counts


def _pad2(x, rows, cols):
    return jnp.pad(x, ((0, rows - x.shape[0]), (0, cols - x.shape[1])))


def init_params(key):
    k1, k2, k3, kb1, kb2, kb3 = jax.random.split(key, 6)
    # GCNConv(128 -> 64)
    w1 = jax.random.normal(k1, (128, 64), jnp.float32) * (1.0 / jnp.sqrt(128.0))
    b1 = jax.random.uniform(kb1, (1, 64), jnp.float32, -1.0, 1.0) / jnp.sqrt(128.0)
    # GCNConv(64 -> 32)
    w2 = jax.random.normal(k2, (64, 32), jnp.float32) * (1.0 / jnp.sqrt(64.0))
    b2 = jax.random.uniform(kb2, (1, 32), jnp.float32, -1.0, 1.0) / jnp.sqrt(64.0)
    # Linear(32 -> 16)
    wc = jax.random.normal(k3, (32, 16), jnp.float32) * (1.0 / jnp.sqrt(32.0))
    bc = jax.random.uniform(kb3, (1, 16), jnp.float32, -1.0, 1.0) / jnp.sqrt(32.0)
    return w1, b1, w2, b2, wc, bc


@functools.partial(jax.jit, static_argnames=("num_graphs",))
def travel_gnn_forward(x, edge_index, batch, params, num_graphs):
    w1, b1, w2, b2, wc, bc = params
    num_nodes = x.shape[0]
    tm, tk, n_pad = _pick_tiles(num_nodes)
    b_pad = max(8, _round_up(num_graphs, 8))

    # Dense graph operators (JAX glue), zero-padded to the tiled sizes so
    # padded rows/cols never contribute.
    a_hat = build_norm_adj(edge_index, num_nodes)
    pool = build_mean_pool(batch, num_graphs, num_nodes)
    a_pad = _pad2(a_hat, n_pad, n_pad).astype(jnp.bfloat16)
    x_pad = _pad2(x, n_pad, C_PAD).astype(jnp.bfloat16)
    pool_pad = _pad2(pool, b_pad, n_pad)                     # f32 (exact 1/cnt)

    # Lane-dense (128-wide) padded parameters; bf16 MXU weights, f32 biases.
    w1p = _pad2(w1, C_PAD, C_PAD).astype(jnp.bfloat16)
    w2p = _pad2(w2, C_PAD, C_PAD).astype(jnp.bfloat16)
    wcp = _pad2(wc, C_PAD, C_PAD)
    b1p = _pad2(b1, 1, C_PAD)
    b2p = _pad2(b2, 1, C_PAD)
    bcp = _pad2(bc, 1, C_PAD)

    # Layer 1: XW1 = X @ W1 (once);  then per row block
    #   XW2 = relu(A_hat @ XW1 + b1) @ W2   (H1 never leaves VMEM)
    xw1 = _feature_transform(x_pad, w1p, tm=tm)
    xw2 = _aggregate_l1(a_pad, xw1, b1p, w2p, tm=tm, tk=tk)

    # Layer 2 + fused mean-pool: per-row-block partial pooled sums of
    #   H2 = A_hat @ XW2 + b2
    partials = _aggregate_pool(a_pad, xw2, b2p, pool_pad,
                               tm=tm, tk=tk, b_pad=b_pad)

    # Epilogue (hoisted out of the hot loop): reduce partials + Linear(32->16)
    out_pad = _classifier(partials, wcp, bcp, b_pad=b_pad)
    return out_pad[:num_graphs, :wc.shape[1]]


# Pure-JAX f32 reference (PyG semantics) for a sanity check
def travel_gnn_ref(x, edge_index, batch, params, num_graphs):
    w1, b1, w2, b2, wc, bc = params
    num_nodes = x.shape[0]
    a_hat = build_norm_adj(edge_index, num_nodes)
    pool = build_mean_pool(batch, num_graphs, num_nodes)
    h1 = jnp.maximum(a_hat @ (x @ w1) + b1, 0.0)
    h2 = a_hat @ (h1 @ w2) + b2
    return (pool @ h2) @ wc + bc


if __name__ == "__main__":
    key = jax.random.PRNGKey(0)
    k_x, k_e, k_p = jax.random.split(key, 3)

    num_nodes = 200          # pads to 256 -> exercises a 2x2 tile grid
    num_edges = 800
    num_graphs = 3
    in_channels = 128

    x = jax.random.normal(k_x, (num_nodes, in_channels), jnp.float32)
    edge_index = jax.random.randint(k_e, (2, num_edges), 0, num_nodes,
                                    dtype=jnp.int32)
    nodes_per_graph = num_nodes // num_graphs
    batch = jnp.minimum(jnp.arange(num_nodes, dtype=jnp.int32) // nodes_per_graph,
                        num_graphs - 1)

    params = init_params(k_p)

    out = travel_gnn_forward(x, edge_index, batch, params, num_graphs)
    out = jax.block_until_ready(out)

    ref = travel_gnn_ref(x, edge_index, batch, params, num_graphs)
    assert out.shape == (num_graphs, 16)
    max_err = float(jnp.max(jnp.abs(out - ref)))
    assert jnp.allclose(out, ref, atol=2e-2, rtol=2e-2), max_err

    print("KERNEL_OK")
</pallas_src>

<mosaic_0001>
module attributes {stable_mosaic.version = 11 : i64} {
  func.func @_xw_kernel(%arg0: i32, %arg1: memref<128x128xbf16, #tpu.memory_space<vmem>>, %arg2: memref<128x128xbf16, #tpu.memory_space<vmem>>, %arg3: memref<128x128xbf16, #tpu.memory_space<vmem>>) attributes {dimension_semantics = [#tpu.dimension_semantics<parallel>], iteration_bounds = array<i64: 2>, scalar_prefetch = 0 : i64, scratch_operands = 0 : i64, tpu.core_type = #tpu.core_type<tc>, window_params = [{transform_indices = @transform_0, window_bounds = array<i64: 128, 128>}, {pipeline_mode = #tpu.pipeline_mode<synchronous>, transform_indices = @transform_1, window_bounds = array<i64: 128, 128>}, {transform_indices = @transform_2, window_bounds = array<i64: 128, 128>}]} {
    %c0 = arith.constant 0 : index
    %c0_0 = arith.constant 0 : index
    %0 = vector.load %arg1[%c0, %c0_0] : memref<128x128xbf16, #tpu.memory_space<vmem>>, vector<128x128xbf16>
    %c0_1 = arith.constant 0 : index
    %c0_2 = arith.constant 0 : index
    %1 = vector.load %arg2[%c0_1, %c0_2] : memref<128x128xbf16, #tpu.memory_space<vmem>>, vector<128x128xbf16>
    %cst = arith.constant dense<0.000000e+00> : vector<128x128xf32>
    %2 = tpu.matmul %0, %1, %cst {dimension_numbers = #tpu.dot_dimension_numbers<[1], [0], [0], [1], [0, 0, 1, 1], [], []>} : vector<128x128xbf16>, vector<128x128xbf16>, vector<128x128xf32> -> vector<128x128xf32>
    %3 = arith.truncf %2 : vector<128x128xf32> to vector<128x128xbf16>
    %c0_3 = arith.constant 0 : index
    %c0_4 = arith.constant 0 : index
    %4 = vector.load %arg3[%c0_3, %c0_4] : memref<128x128xbf16, #tpu.memory_space<vmem>>, vector<128x128xbf16>
    tpu.vector_store %arg3[%c0_3, %c0_4], %3 {strides = array<i32>} : memref<128x128xbf16, #tpu.memory_space<vmem>>, vector<128x128xbf16>,
    return
  }
  func.func @transform_0(%arg0: i32) -> (i32, i32) {
    %c0_i32 = arith.constant 0 : i32
    %c0_i32_0 = arith.constant 0 : i32
    return %arg0, %c0_i32 : i32, i32
  }
  func.func @transform_1(%arg0: i32) -> (i32, i32) {
    %c0_i32 = arith.constant 0 : i32
    %c0_i32_0 = arith.constant 0 : i32
    %c0_i32_1 = arith.constant 0 : i32
    return %c0_i32, %c0_i32_0 : i32, i32
  }
  func.func @transform_2(%arg0: i32) -> (i32, i32) {
    %c0_i32 = arith.constant 0 : i32
    %c0_i32_0 = arith.constant 0 : i32
    return %arg0, %c0_i32 : i32, i32
  }
}

module attributes {stable_mosaic.version = 11 : i64} {
  func.func @_agg_kernel(%arg0: i32, %arg1: i32, %arg2: memref<128x128xbf16, #tpu.memory_space<vmem>>, %arg3: memref<128x128xbf16, #tpu.memory_space<vmem>>, %arg4: memref<1x128xf32, #tpu.memory_space<vmem>>, %arg5: memref<128x128xbf16, #tpu.memory_space<vmem>>, %arg6: memref<128x128xbf16, #tpu.memory_space<vmem>>, %arg7: memref<128x128xf32, #tpu.memory_space<vmem>>) attributes {dimension_semantics = [#tpu.dimension_semantics<parallel>, #tpu.dimension_semantics<arbitrary>], iteration_bounds = array<i64: 2, 2>, scalar_prefetch = 0 : i64, scratch_operands = 1 : i64, tpu.core_type = #tpu.core_type<tc>, window_params = [{transform_indices = @transform_0, window_bounds = array<i64: 128, 128>}, {transform_indices = @transform_1, window_bounds = array<i64: 128, 128>}, {pipeline_mode = #tpu.pipeline_mode<synchronous>, transform_indices = @transform_2, window_bounds = array<i64: 1, 128>}, {pipeline_mode = #tpu.pipeline_mode<synchronous>, transform_indices = @transform_3, window_bounds = array<i64: 128, 128>}, {transform_indices = @transform_4, window_bounds = array<i64: 128, 128>}]} {
    %c0_i32 = arith.constant 0 : i32
    %0 = arith.cmpi eq, %arg1, %c0_i32 : i32
    %1 = arith.extui %0 : i1 to i32
    %c0_i32_0 = arith.constant 0 : i32
    %2 = arith.cmpi ne, %1, %c0_i32_0 : i32
    scf.if %2 {
      %cst_9 = arith.constant 0.000000e+00 : f32
      %12 = vector.broadcast %cst_9 : f32 to vector<128x128xf32>
      %c0_10 = arith.constant 0 : index
      %c0_11 = arith.constant 0 : index
      %13 = vector.load %arg7[%c0_10, %c0_11] : memref<128x128xf32, #tpu.memory_space<vmem>>, vector<128x128xf32>
      tpu.vector_store %arg7[%c0_10, %c0_11], %12 {strides = array<i32>} : memref<128x128xf32, #tpu.memory_space<vmem>>, vector<128x128xf32>,
    } else {
    }
    %c0 = arith.constant 0 : index
    %c0_1 = arith.constant 0 : index
    %3 = vector.load %arg7[%c0, %c0_1] : memref<128x128xf32, #tpu.memory_space<vmem>>, vector<128x128xf32>
    %c0_2 = arith.constant 0 : index
    %c0_3 = arith.constant 0 : index
    %4 = vector.load %arg2[%c0_2, %c0_3] : memref<128x128xbf16, #tpu.memory_space<vmem>>, vector<128x128xbf16>
    %c0_4 = arith.constant 0 : index
    %c0_5 = arith.constant 0 : index
    %5 = vector.load %arg3[%c0_4, %c0_5] : memref<128x128xbf16, #tpu.memory_space<vmem>>, vector<128x128xbf16>
    %cst = arith.constant dense<0.000000e+00> : vector<128x128xf32>
    %6 = tpu.matmul %4, %5, %cst {dimension_numbers = #tpu.dot_dimension_numbers<[1], [0], [0], [1], [0, 0, 1, 1], [], []>} : vector<128x128xbf16>, vector<128x128xbf16>, vector<128x128xf32> -> vector<128x128xf32>
    %7 = arith.addf %3, %6 : vector<128x128xf32>
    %c0_6 = arith.constant 0 : index
    %c0_7 = arith.constant 0 : index
    %8 = vector.load %arg7[%c0_6, %c0_7] : memref<128x128xf32, #tpu.memory_space<vmem>>, vector<128x128xf32>
    tpu.vector_store %arg7[%c0_6, %c0_7], %7 {strides = array<i32>} : memref<128x128xf32, #tpu.memory_space<vmem>>, vector<128x128xf32>,
    %c1_i32 = arith.constant 1 : i32
    %9 = arith.cmpi eq, %arg1, %c1_i32 : i32
    %10 = arith.extui %9 : i1 to i32
    %c0_i32_8 = arith.constant 0 : i32
    %11 = arith.cmpi ne, %10, %c0_i32_8 : i32
    scf.if %11 {
      %c0_9 = arith.constant 0 : index
      %c0_10 = arith.constant 0 : index
      %12 = vector.load %arg7[%c0_9, %c0_10] : memref<128x128xf32, #tpu.memory_space<vmem>>, vector<128x128xf32>
      %c0_11 = arith.constant 0 : index
      %c0_12 = arith.constant 0 : index
      %13 = vector.load %arg4[%c0_11, %c0_12] : memref<1x128xf32, #tpu.memory_space<vmem>>, vector<1x128xf32>
      %14 = vector.broadcast %13 : vector<1x128xf32> to vector<128x128xf32>
      %15 = arith.addf %12, %14 : vector<128x128xf32>
      %cst_13 = arith.constant 0.000000e+00 : f32
      %16 = vector.broadcast %cst_13 : f32 to vector<128x128xf32>
      %17 = arith.maximumf %15, %16 : vector<128x128xf32>
      %18 = arith.truncf %17 : vector<128x128xf32> to vector<128x128xbf16>
      %c0_14 = arith.constant 0 : index
      %c0_15 = arith.constant 0 : index
      %19 = vector.load %arg5[%c0_14, %c0_15] : memref<128x128xbf16, #tpu.memory_space<vmem>>, vector<128x128xbf16>
      %cst_16 = arith.constant dense<0.000000e+00> : vector<128x128xf32>
      %20 = tpu.matmul %18, %19, %cst_16 {dimension_numbers = #tpu.dot_dimension_numbers<[1], [0], [0], [1], [0, 0, 1, 1], [], []>} : vector<128x128xbf16>, vector<128x128xbf16>, vector<128x128xf32> -> vector<128x128xf32>
      %21 = arith.truncf %20 : vector<128x128xf32> to vector<128x128xbf16>
      %c0_17 = arith.constant 0 : index
      %c0_18 = arith.constant 0 : index
      %22 = vector.load %arg6[%c0_17, %c0_18] : memref<128x128xbf16, #tpu.memory_space<vmem>>, vector<128x128xbf16>
      tpu.vector_store %arg6[%c0_17, %c0_18], %21 {strides = array<i32>} : memref<128x128xbf16, #tpu.memory_space<vmem>>, vector<128x128xbf16>,
    } else {
    }
    return
  }
  func.func @transform_0(%arg0: i32, %arg1: i32) -> (i32, i32) {
    %c0_i32 = arith.constant 0 : i32
    return %arg0, %arg1 : i32, i32
  }
  func.func @transform_1(%arg0: i32, %arg1: i32) -> (i32, i32) {
    %c0_i32 = arith.constant 0 : i32
    %c0_i32_0 = arith.constant 0 : i32
    return %arg1, %c0_i32 : i32, i32
  }
  func.func @transform_2(%arg0: i32, %arg1: i32) -> (i32, i32) {
    %c0_i32 = arith.constant 0 : i32
    %c0_i32_0 = arith.constant 0 : i32
    %c0_i32_1 = arith.constant 0 : i32
    return %c0_i32, %c0_i32_0 : i32, i32
  }
  func.func @transform_3(%arg0: i32, %arg1: i32) -> (i32, i32) {
    %c0_i32 = arith.constant 0 : i32
    %c0_i32_0 = arith.constant 0 : i32
    %c0_i32_1 = arith.constant 0 : i32
    return %c0_i32, %c0_i32_0 : i32, i32
  }
  func.func @transform_4(%arg0: i32, %arg1: i32) -> (i32, i32) {
    %c0_i32 = arith.constant 0 : i32
    %c0_i32_0 = arith.constant 0 : i32
    return %arg0, %c0_i32 : i32, i32
  }
}

module attributes {stable_mosaic.version = 11 : i64} {
  func.func @_agg_pool_kernel(%arg0: i32, %arg1: i32, %arg2: memref<128x128xbf16, #tpu.memory_space<vmem>>, %arg3: memref<128x128xbf16, #tpu.memory_space<vmem>>, %arg4: memref<1x128xf32, #tpu.memory_space<vmem>>, %arg5: memref<8x128xf32, #tpu.memory_space<vmem>>, %arg6: memref<1x8x128xf32, #tpu.memory_space<vmem>>, %arg7: memref<128x128xf32, #tpu.memory_space<vmem>>) attributes {dimension_semantics = [#tpu.dimension_semantics<parallel>, #tpu.dimension_semantics<arbitrary>], iteration_bounds = array<i64: 2, 2>, scalar_prefetch = 0 : i64, scratch_operands = 1 : i64, tpu.core_type = #tpu.core_type<tc>, window_params = [{transform_indices = @transform_0, window_bounds = array<i64: 128, 128>}, {transform_indices = @transform_1, window_bounds = array<i64: 128, 128>}, {pipeline_mode = #tpu.pipeline_mode<synchronous>, transform_indices = @transform_2, window_bounds = array<i64: 1, 128>}, {transform_indices = @transform_3, window_bounds = array<i64: 8, 128>}, {transform_indices = @transform_4, window_bounds = array<i64: 1, 8, 128>}]} {
    %c0_i32 = arith.constant 0 : i32
    %0 = arith.cmpi eq, %arg1, %c0_i32 : i32
    %1 = arith.extui %0 : i1 to i32
    %c0_i32_0 = arith.constant 0 : i32
    %2 = arith.cmpi ne, %1, %c0_i32_0 : i32
    scf.if %2 {
      %cst_9 = arith.constant 0.000000e+00 : f32
      %12 = vector.broadcast %cst_9 : f32 to vector<128x128xf32>
      %c0_10 = arith.constant 0 : index
      %c0_11 = arith.constant 0 : index
      %13 = vector.load %arg7[%c0_10, %c0_11] : memref<128x128xf32, #tpu.memory_space<vmem>>, vector<128x128xf32>
      tpu.vector_store %arg7[%c0_10, %c0_11], %12 {strides = array<i32>} : memref<128x128xf32, #tpu.memory_space<vmem>>, vector<128x128xf32>,
    } else {
    }
    %c0 = arith.constant 0 : index
    %c0_1 = arith.constant 0 : index
    %3 = vector.load %arg7[%c0, %c0_1] : memref<128x128xf32, #tpu.memory_space<vmem>>, vector<128x128xf32>
    %c0_2 = arith.constant 0 : index
    %c0_3 = arith.constant 0 : index
    %4 = vector.load %arg2[%c0_2, %c0_3] : memref<128x128xbf16, #tpu.memory_space<vmem>>, vector<128x128xbf16>
    %c0_4 = arith.constant 0 : index
    %c0_5 = arith.constant 0 : index
    %5 = vector.load %arg3[%c0_4, %c0_5] : memref<128x128xbf16, #tpu.memory_space<vmem>>, vector<128x128xbf16>
    %cst = arith.constant dense<0.000000e+00> : vector<128x128xf32>
    %6 = tpu.matmul %4, %5, %cst {dimension_numbers = #tpu.dot_dimension_numbers<[1], [0], [0], [1], [0, 0, 1, 1], [], []>} : vector<128x128xbf16>, vector<128x128xbf16>, vector<128x128xf32> -> vector<128x128xf32>
    %7 = arith.addf %3, %6 : vector<128x128xf32>
    %c0_6 = arith.constant 0 : index
    %c0_7 = arith.constant 0 : index
    %8 = vector.load %arg7[%c0_6, %c0_7] : memref<128x128xf32, #tpu.memory_space<vmem>>, vector<128x128xf32>
    tpu.vector_store %arg7[%c0_6, %c0_7], %7 {strides = array<i32>} : memref<128x128xf32, #tpu.memory_space<vmem>>, vector<128x128xf32>,
    %c1_i32 = arith.constant 1 : i32
    %9 = arith.cmpi eq, %arg1, %c1_i32 : i32
    %10 = arith.extui %9 : i1 to i32
    %c0_i32_8 = arith.constant 0 : i32
    %11 = arith.cmpi ne, %10, %c0_i32_8 : i32
    scf.if %11 {
      %c0_9 = arith.constant 0 : index
      %c0_10 = arith.constant 0 : index
      %12 = vector.load %arg7[%c0_9, %c0_10] : memref<128x128xf32, #tpu.memory_space<vmem>>, vector<128x128xf32>
      %c0_11 = arith.constant 0 : index
      %c0_12 = arith.constant 0 : index
      %13 = vector.load %arg4[%c0_11, %c0_12] : memref<1x128xf32, #tpu.memory_space<vmem>>, vector<1x128xf32>
      %14 = vector.broadcast %13 : vector<1x128xf32> to vector<128x128xf32>
      %15 = arith.addf %12, %14 : vector<128x128xf32>
      %c0_13 = arith.constant 0 : index
      %c0_14 = arith.constant 0 : index
      %16 = vector.load %arg5[%c0_13, %c0_14] : memref<8x128xf32, #tpu.memory_space<vmem>>, vector<8x128xf32>
      %cst_15 = arith.constant dense<0.000000e+00> : vector<8x128xf32>
      %17 = tpu.matmul %16, %15, %cst_15 {dimension_numbers = #tpu.dot_dimension_numbers<[1], [0], [0], [1], [0, 0, 1, 1], [], []>} : vector<8x128xf32>, vector<128x128xf32>, vector<8x128xf32> -> vector<8x128xf32>
      %c0_16 = arith.constant 0 : index
      %c0_17 = arith.constant 0 : index
      %c0_18 = arith.constant 0 : index
      %18 = vector.load %arg6[%c0_16, %c0_17, %c0_18] : memref<1x8x128xf32, #tpu.memory_space<vmem>>, vector<1x8x128xf32>
      %19 = vector.shape_cast %18 : vector<1x8x128xf32> to vector<8x128xf32>
      %20 = vector.shape_cast %17 : vector<8x128xf32> to vector<1x8x128xf32>
      tpu.vector_store %arg6[%c0_16, %c0_17, %c0_18], %20 {strides = array<i32>} : memref<1x8x128xf32, #tpu.memory_space<vmem>>, vector<1x8x128xf32>,
    } else {
    }
    return
  }
  func.func @transform_0(%arg0: i32, %arg1: i32) -> (i32, i32) {
    %c0_i32 = arith.constant 0 : i32
    return %arg0, %arg1 : i32, i32
  }
  func.func @transform_1(%arg0: i32, %arg1: i32) -> (i32, i32) {
    %c0_i32 = arith.constant 0 : i32
    %c0_i32_0 = arith.constant 0 : i32
    return %arg1, %c0_i32 : i32, i32
  }
  func.func @transform_2(%arg0: i32, %arg1: i32) -> (i32, i32) {
    %c0_i32 = arith.constant 0 : i32
    %c0_i32_0 = arith.constant 0 : i32
    %c0_i32_1 = arith.constant 0 : i32
    return %c0_i32, %c0_i32_0 : i32, i32
  }
  func.func @transform_3(%arg0: i32, %arg1: i32) -> (i32, i32) {
    %c0_i32 = arith.constant 0 : i32
    %c0_i32_0 = arith.constant 0 : i32
    return %c0_i32, %arg0 : i32, i32
  }
  func.func @transform_4(%arg0: i32, %arg1: i32) -> (i32, i32, i32) {
    %c0_i32 = arith.constant 0 : i32
    %c0_i32_0 = arith.constant 0 : i32
    %c0_i32_1 = arith.constant 0 : i32
    return %arg0, %c0_i32, %c0_i32_0 : i32, i32, i32
  }
}

module attributes {stable_mosaic.version = 11 : i64} {
  func.func @_classifier_kernel(%arg0: memref<2x8x128xf32, #tpu.memory_space<vmem>>, %arg1: memref<128x128xf32, #tpu.memory_space<vmem>>, %arg2: memref<1x128xf32, #tpu.memory_space<vmem>>, %arg3: memref<8x128xf32, #tpu.memory_space<vmem>>) attributes {dimension_semantics = [], scalar_prefetch = 0 : i64, scratch_operands = 0 : i64, tpu.core_type = #tpu.core_type<tc>} {
    %c0 = arith.constant 0 : index
    %c0_0 = arith.constant 0 : index
    %c0_1 = arith.constant 0 : index
    %0 = vector.load %arg0[%c0, %c0_0, %c0_1] : memref<2x8x128xf32, #tpu.memory_space<vmem>>, vector<2x8x128xf32>
    %cst = arith.constant dense<0.000000e+00> : vector<8x128xf32>
    %1 = vector.multi_reduction <add>, %0, %cst [0] : vector<2x8x128xf32> to vector<8x128xf32>
    %c0_2 = arith.constant 0 : index
    %c0_3 = arith.constant 0 : index
    %2 = vector.load %arg1[%c0_2, %c0_3] : memref<128x128xf32, #tpu.memory_space<vmem>>, vector<128x128xf32>
    %cst_4 = arith.constant dense<0.000000e+00> : vector<8x128xf32>
    %3 = tpu.matmul %1, %2, %cst_4 {dimension_numbers = #tpu.dot_dimension_numbers<[1], [0], [0], [1], [0, 0, 1, 1], [], []>} : vector<8x128xf32>, vector<128x128xf32>, vector<8x128xf32> -> vector<8x128xf32>
    %c0_5 = arith.constant 0 : index
    %c0_6 = arith.constant 0 : index
    %4 = vector.load %arg2[%c0_5, %c0_6] : memref<1x128xf32, #tpu.memory_space<vmem>>, vector<1x128xf32>
    %5 = vector.broadcast %4 : vector<1x128xf32> to vector<8x128xf32>
    %6 = arith.addf %3, %5 : vector<8x128xf32>
    %c0_7 = arith.constant 0 : index
    %c0_8 = arith.constant 0 : index
    %7 = vector.load %arg3[%c0_7, %c0_8] : memref<8x128xf32, #tpu.memory_space<vmem>>, vector<8x128xf32>
    tpu.vector_store %arg3[%c0_7, %c0_8], %6 {strides = array<i32>} : memref<8x128xf32, #tpu.memory_space<vmem>>, vector<8x128xf32>,
    return
  }
}

</mosaic_0001>

<bundles_post_ra>
// kernel: travel_gnn_forward.4
= control target key start
LH: loop header
LB: loop body
LE: loop exit
PB: predicated region body
PF: predicated region fallthrough
CT: control target
= control target key end

     0   :  { %s605_s9 = smov 0   ;;  %s653_s0 = inlined_call_operand.vmem [shape: bf16[256,128], index: 0, kind: input, shape index: {}]   ;;  %s654_s1 = inlined_call_operand.vmem [shape: bf16[128,128], index: 1, kind: input, shape index: {}]   ;;  %s655_s2 = inlined_call_operand.vmem [shape: bf16[256,128], index: 2, kind: output, shape index: {}]  }
   0x1 LB: > { %s412_s10 = sadd.s32 4294967295, %s588_s9   ;;  %p416_p0 = scmp.ge.s32.totalorder %s588_s9, 1  ;;  %s588_s9 = sphi %s605_s9, %s12_s9  }
   0x2   : > { %p113_p1 = scmp.lt.s32.totalorder %s588_s9, 3 }
   0x4   : > { %p114_p2 = pnand %p416_p0, %p113_p1 }
   0x5   : > { %s417_s19 = sshll.u32 (!%p114_p2), %s412_s10, 4 }
   0x6   : > { %117 = sbr.rel (%p114_p2) target bundleno = 204 (0xcc), region = 28  ;;  %p136_p3 = scmp.lt.s32.totalorder (!%p114_p2), %s417_s19, 31 }
   0xb   : > { %v502_v0 = vld [vmem:[%s654_s1 + $0x38] sm:$0xff]  ;;  %v501_v1 = vld [vmem:[%s654_s1 + $0x30] sm:$0xff]  ;;  %v500_v2 = vld [vmem:[%s654_s1 + $0x28] sm:$0xff]  ;;  %s657_s19 = smov (!%p136_p3, %s417_s19), 31 }
   0xc   : > { %275 = vmatpush.bf16.msra.mxu0 %v502_v0  ;;  %550 = vmatpush.bf16.msra.mxu1 %v502_v0  ;;  %v499_v3 = vld [vmem:[%s654_s1 + $0x20] sm:$0xff]  ;;  %v498_v4 = vld [vmem:[%s654_s1 + $0x18] sm:$0xff]  ;;  %v497_v5 = vld [vmem:[%s654_s1 + $0x10] sm:$0xff]  ;;  %s418_s26 = sshll.u32 %s657_s19, 2 }
   0xd   : > { %551 = vmatpush.bf16.msra.mxu2 %v502_v0  ;;  %552 = vmatpush.bf16.msra.mxu3 %v502_v0  ;;  %v496_v6 = vld [vmem:[%s654_s1 + $0x8] sm:$0xff]  ;;  %v495_v7 = vld [vmem:[%s654_s1] sm:$0xff]  ;;  %s139_s3 = scalar_lea.vmem %s653_s0, %s418_s26  ;;  %s145_s6 = scalar_lea.vmem %s655_s2, %s418_s26 }
   0xe   : > { %v487_v8 = vld [vmem:[%s139_s3] sm:$0xff]  ;;  %v489_v9 = vld [vmem:[%s139_s3 + $0x10] sm:$0xff]  ;;  %v488_v12 = vld [vmem:[%s139_s3 + $0x8] sm:$0xff] }
   0xf   : > { %v491_v10 = vld [vmem:[%s139_s3 + $0x20] sm:$0xff]  ;;  %v493_v11 = vld [vmem:[%s139_s3 + $0x30] sm:$0xff]  ;;  %v490_v13 = vld [vmem:[%s139_s3 + $0x18] sm:$0xff] }
  0x10   : > { %276 = vmatpush.bf16.msra.mxu0 %v501_v1  ;;  %553 = vmatpush.bf16.msra.mxu1 %v501_v1  ;;  %v492_v14 = vld [vmem:[%s139_s3 + $0x28] sm:$0xff]  ;;  %v494_v15 = vld [vmem:[%s139_s3 + $0x38] sm:$0xff] }
  0x11   : > { %554 = vmatpush.bf16.msra.mxu2 %v501_v1  ;;  %555 = vmatpush.bf16.msra.mxu3 %v501_v1 }
  0x14   : > { %277 = vmatpush.bf16.msra.mxu0 %v500_v2  ;;  %556 = vmatpush.bf16.msra.mxu1 %v500_v2 }
  0x15   : > { %557 = vmatpush.bf16.msra.mxu2 %v500_v2  ;;  %558 = vmatpush.bf16.msra.mxu3 %v500_v2 }
  0x18   : > { %278 = vmatpush.bf16.msra.mxu0 %v499_v3  ;;  %559 = vmatpush.bf16.msra.mxu1 %v499_v3 }
  0x19   : > { %560 = vmatpush.bf16.msra.mxu2 %v499_v3  ;;  %561 = vmatpush.bf16.msra.mxu3 %v499_v3 }
  0x1c   : > { %279 = vmatpush.bf16.msra.mxu0 %v498_v4  ;;  %562 = vmatpush.bf16.msra.mxu1 %v498_v4 }
  0x1d   : > { %563 = vmatpush.bf16.msra.mxu2 %v498_v4  ;;  %564 = vmatpush.bf16.msra.mxu3 %v498_v4 }
  0x20   : > { %280 = vmatpush.bf16.msra.mxu0 %v497_v5  ;;  %565 = vmatpush.bf16.msra.mxu1 %v497_v5 }
  0x21   : > { %566 = vmatpush.bf16.msra.mxu2 %v497_v5  ;;  %567 = vmatpush.bf16.msra.mxu3 %v497_v5 }
  0x24   : > { %281 = vmatpush.bf16.msra.mxu0 %v496_v6  ;;  %568 = vmatpush.bf16.msra.mxu1 %v496_v6 }
  0x25   : > { %569 = vmatpush.bf16.msra.mxu2 %v496_v6  ;;  %570 = vmatpush.bf16.msra.mxu3 %v496_v6 }
  0x28   : > { %282 = vmatpush.bf16.msra.mxu0 %v495_v7  ;;  %571 = vmatpush.bf16.msra.mxu1 %v495_v7 }
  0x29   : > { %572 = vmatpush.bf16.msra.mxu2 %v495_v7  ;;  %573 = vmatpush.bf16.msra.mxu3 %v495_v7 }
  0x2b   : > { %283 = vmatmul.bf16.vlgmr.msra.gmra.mxu0 %v487_v8  ;;  %293 = vmatmul.bf16.vlgmr.msra.gmra.mxu1 %v489_v9 }
  0x2c   : > { %303 = vmatmul.bf16.vlgmr.msra.gmra.mxu2 %v491_v10  ;;  %313 = vmatmul.bf16.vlgmr.msra.gmra.mxu3 %v493_v11 }
  0x3b   : > { %288 = vmatmul.bf16.gmra.mxu0 %v488_v12  ;;  %298 = vmatmul.bf16.gmra.mxu1 %v490_v13 }
  0x3c   : > { %308 = vmatmul.bf16.gmra.mxu2 %v492_v14  ;;  %318 = vmatmul.bf16.gmra.mxu3 %v494_v15 }
  0xa8   : > { %v284_v16 = vpop.f32.mrf.mxu0  ;;  %v294_v17 = vpop.f32.mrf.mxu1 }
  0xaf   : > { %v304_v18 = vpop.f32.mrf.mxu2  ;;  %v314_v19 = vpop.f32.mrf.mxu3 }
  0xb0   : > { %v286_v20 = vpop.f32.mrf.mxu0  ;;  %v296_v21 = vpop.f32.mrf.mxu1 }
  0xb1   : > { %v506_v22 = vpack.c.bf16 %v286_v20, %v284_v16  ;;  %v516_v23 = vpack.c.bf16 %v296_v21, %v294_v17 }
  0xb3   : > { %507 = vst [vmem:[%s145_s6] sm:$0xff] %v506_v22  }
  0xb4   : > { %544 = vst [vmem:[%s145_s6 + $0x10] sm:$0xff] %v516_v23  }
  0xb7   : > { %v306_v24 = vpop.f32.mrf.mxu2  ;;  %v316_v25 = vpop.f32.mrf.mxu3 }
  0xb8   : > { %v526_v26 = vpack.c.bf16 %v306_v24, %v304_v18  ;;  %v536_v27 = vpack.c.bf16 %v316_v25, %v314_v19  ;;  %v289_v28 = vpop.f32.mrf.mxu0  ;;  %v299_v29 = vpop.f32.mrf.mxu1 }
  0xba   : > { %546 = vst [vmem:[%s145_s6 + $0x20] sm:$0xff] %v526_v26  }
  0xbb   : > { %548 = vst [vmem:[%s145_s6 + $0x30] sm:$0xff] %v536_v27  }
  0xbf   : > { %v309_v30 = vpop.f32.mrf.mxu2  ;;  %v319_v31 = vpop.f32.mrf.mxu3 }
  0xc0   : > { %v291_v32 = vpop.f32.mrf.mxu0  ;;  %v301_v33 = vpop.f32.mrf.mxu1 }
  0xc1   : > { %v511_v34 = vpack.c.bf16 %v291_v32, %v289_v28  ;;  %v521_v35 = vpack.c.bf16 %v301_v33, %v299_v29 }
  0xc3   : > { %543 = vst [vmem:[%s145_s6 + $0x8] sm:$0xff] %v511_v34  }
  0xc4   : > { %545 = vst [vmem:[%s145_s6 + $0x18] sm:$0xff] %v521_v35  }
  0xc7   : > { %v311_v36 = vpop.f32.mrf.mxu2  ;;  %v321_v37 = vpop.f32.mrf.mxu3 }
  0xc8   : > { %v531_v38 = vpack.c.bf16 %v311_v36, %v309_v30  ;;  %v541_v39 = vpack.c.bf16 %v321_v37, %v319_v31 }
  0xca   : > { %547 = vst [vmem:[%s145_s6 + $0x28] sm:$0xff] %v531_v38  }
  0xcb   : > { %549 = vst [vmem:[%s145_s6 + $0x38] sm:$0xff] %v541_v39  }
  0xcc PF: > { %s12_s9 = sadd.s32 1, %s588_s9  }
  0xcd   : > { %p9_p4 = scmp.ge.s32.totalorder %s12_s9, 4  }
  0xcf   :  { %11 = sbr.rel (!%p9_p4) target bundleno = 1 (0x1), region = 58 }

// kernel: travel_gnn_forward.5
= control target key start
LH: loop header
LB: loop body
LE: loop exit
PB: predicated region body
PF: predicated region fallthrough
CT: control target
= control target key end

     0   :  { %s1258_s15 = smov 0   ;;  %s1260_s16 = smov 0   ;;  %s1445_s0 = inlined_call_operand.vmem [shape: bf16[256,256], index: 0, kind: input, shape index: {}]   ;;  %s1446_s1 = inlined_call_operand.vmem [shape: bf16[256,128], index: 1, kind: input, shape index: {}]   ;;  %s1447_s2 = inlined_call_operand.vmem [shape: f32[1,128], index: 2, kind: input, shape index: {}]   ;;  %s1448_s3 = inlined_call_operand.vmem [shape: bf16[128,128], index: 3, kind: input, shape index: {}]   ;;  %s1449_s4 = inlined_call_operand.vmem [shape: bf16[256,128], index: 4, kind: output, shape index: {}]  }
   0x1   :  { %s1262_s17 = smov 0   ;;  %s1264_s18 = smov 0  }
   0x2   :  { %s1266_s19 = smov 0   ;;  %s1268_s20 = smov 0  }
   0x3   :  { %s1270_s21 = smov 0  }
   0x4 LB: > { %s23_s22 = sadd.s32 1, %s1222_s19  ;;  %s26_s23 = sadd.s32 1, %s1226_s20  ;;  %s1230_s21 = sphi %s1270_s21, %s14_s21   ;;  %s1226_s20 = sphi %s1268_s20, %s1455_s20   ;;  %s1222_s19 = sphi %s1266_s19, %s1454_s19   ;;  %s1218_s18 = sphi %s1264_s18, %s1453_s18   ;;  %s1214_s17 = sphi %s1262_s17, %s1452_s17   ;;  %s1210_s16 = sphi %s1260_s16, %s1451_s16   ;;  %s1206_s15 = sphi %s1258_s15, %s1450_s15  }
   0x5   : > { %p24_p0 = scmp.ge.s32.totalorder %s23_s22, 2  ;;  %p42_p1 = scmp.ne.s32.totalorder %s1210_s16, %s1206_s15 }
   0x6   : > { %p43_p2 = scmp.eq.s32.totalorder %s1230_s21, 0  ;;  %s35_s27 = sadd.s32 1, %s1210_s16 }
   0x7   : > { %s1457_s22 = smov (%p24_p0, %s23_s22), 0  ;;  %s1459_s23 = smov (!%p24_p0, %s26_s23), %s1226_s20 }
   0x8   : > { %p44_p3 = por %p43_p2, %p42_p1  ;;  %p28_p4 = scmp.ge.s32.totalorder %s1459_s23, 2 }
   0x9   : > { %s31_s24 = ssub.s32 %s1222_s19, %s1457_s22  ;;  %p887_p6 = scmp.ge.s32.totalorder %s1230_s21, 4 }
   0xa   : > { %s1461_s23 = smov (%p28_p4, %s1459_s23), 0 }
   0xb   : > { %s30_s25 = ssub.s32 %s1226_s20, %s1461_s23  ;;  %168 = sbr.rel (%p887_p6) target bundleno = 38 (0x26), region = 24 }
   0xc   : > { %s32_s26 = sor.u32 %s31_s24, %s30_s25 }
   0xd   : > { %p33_p5 = scmp.eq.s32.totalorder %s32_s26, 0 }
   0xf   : > { %s1309_s28 = scalar_select %p33_p5, %s1210_s16, %s35_s27  }
  0x10   : > { %171 = sbr.rel (!%p44_p3) target bundleno = 38 (0x26), region = 28  ;;  %s173_s29 = sand.u32 (%p44_p3), 1, %s1210_s16  }
  0x11   : > { %s998_s30 = sshll.u32 (%p44_p3), %s1226_s20, 5  ;;  %s888_s5 = sshll.u32 (%p44_p3), %s173_s29, 6 }
  0x12   : > { %s178_s6 = sadd.s32 (%p44_p3), %s1222_s19, %s998_s30  ;;  %s175_s11 = scalar_lea.vmem (%p44_p3), [#allocation3], %s888_s5 }
  0x13   : > { %s891_s7 = sshll.u32 (%p44_p3), %s178_s6, 2 }
  0x14   : > { %s1318_s10 = scalar_lea.vmem (%p44_p3), %s1445_s0, %s891_s7 }
  0x15   : > { %v197_v0 = vld [vmem:[%s1318_s10] sm:$0xf]  ;;  %v199_v1 = vld [vmem:[%s1318_s10 + $0x8] sm:$0xf]  ;;  %v201_v2 = vld [vmem:[%s1318_s10 + $0x10] sm:$0xf] }
  0x16   : > { %198 = vst [vmem:[%s175_s11] sm:$0xf] %v197_v0  ;;  %v203_v3 = vld [vmem:[%s1318_s10 + $0x18] sm:$0xf]  ;;  %v205_v4 = vld [vmem:[%s1318_s10 + $0x20] sm:$0xf] }
  0x17   : > { %200 = vst [vmem:[%s175_s11 + $0x4] sm:$0xf] %v199_v1  ;;  %v207_v5 = vld [vmem:[%s1318_s10 + $0x28] sm:$0xf]  ;;  %v209_v6 = vld [vmem:[%s1318_s10 + $0x30] sm:$0xf] }
  0x18   : > { %202 = vst [vmem:[%s175_s11 + $0x8] sm:$0xf] %v201_v2  ;;  %v211_v7 = vld [vmem:[%s1318_s10 + $0x38] sm:$0xf]  ;;  %v213_v8 = vld [vmem:[%s1318_s10 + $0x40] sm:$0xf] }
  0x19   : > { %204 = vst [vmem:[%s175_s11 + $0xc] sm:$0xf] %v203_v3  ;;  %v215_v9 = vld [vmem:[%s1318_s10 + $0x48] sm:$0xf]  ;;  %v217_v10 = vld [vmem:[%s1318_s10 + $0x50] sm:$0xf] }
  0x1a   : > { %206 = vst [vmem:[%s175_s11 + $0x10] sm:$0xf] %v205_v4  ;;  %v219_v11 = vld [vmem:[%s1318_s10 + $0x58] sm:$0xf]  ;;  %v221_v12 = vld [vmem:[%s1318_s10 + $0x60] sm:$0xf] }
  0x1b   : > { %208 = vst [vmem:[%s175_s11 + $0x14] sm:$0xf] %v207_v5  ;;  %v223_v13 = vld [vmem:[%s1318_s10 + $0x68] sm:$0xf]  ;;  %v225_v14 = vld [vmem:[%s1318_s10 + $0x70] sm:$0xf] }
  0x1c   : > { %210 = vst [vmem:[%s175_s11 + $0x18] sm:$0xf] %v209_v6  ;;  %v227_v15 = vld [vmem:[%s1318_s10 + $0x78] sm:$0xf] }
  0x1d   : > { %212 = vst [vmem:[%s175_s11 + $0x1c] sm:$0xf] %v211_v7 }
  0x1e   : > { %214 = vst [vmem:[%s175_s11 + $0x20] sm:$0xf] %v213_v8 }
  0x1f   : > { %216 = vst [vmem:[%s175_s11 + $0x24] sm:$0xf] %v215_v9 }
  0x20   : > { %218 = vst [vmem:[%s175_s11 + $0x28] sm:$0xf] %v217_v10 }
  0x21   : > { %220 = vst [vmem:[%s175_s11 + $0x2c] sm:$0xf] %v219_v11 }
  0x22   : > { %222 = vst [vmem:[%s175_s11 + $0x30] sm:$0xf] %v221_v12 }
  0x23   : > { %224 = vst [vmem:[%s175_s11 + $0x34] sm:$0xf] %v223_v13 }
  0x24   : > { %226 = vst [vmem:[%s175_s11 + $0x38] sm:$0xf] %v225_v14 }
  0x25   : > { %228 = vst [vmem:[%s175_s11 + $0x3c] sm:$0xf] %v227_v15 }
  0x26 PF: > { %p892_p7 = scmp.ge.s32.totalorder %s1230_s21, 1  ;;  %p292_p8 = scmp.lt.s32.totalorder %s1230_s21, 5 }
  0x28   : > { %p293_p9 = pnand %p892_p7, %p292_p8 }
  0x29   : > { %s299_s12 = sand.u32 (!%p293_p9), 1, %s1206_s15   ;;  %s894_s13 = sshll.u32 (!%p293_p9), %s1214_s17, 4 }
  0x2a   : > { %296 = sbr.rel (%p293_p9) target bundleno = 458 (0x1ca), region = 73  ;;  %s893_s14 = sshll.u32 (!%p293_p9), %s299_s12, 6 }
  0x2b   : > { %p331_p10 = scmp.lt.s32.totalorder (!%p293_p9), %s894_s13, 31  ;;  %s896_s24 = sshll.u32 (!%p293_p9), %s1218_s18, 4 }
  0x2c   : > { %p337_p11 = scmp.lt.s32.totalorder (!%p293_p9), %s896_s24, 31  ;;  %s1351_s15 = scalar_lea.vmem (!%p293_p9), [#allocation3], %s893_s14 }
  0x2d   : > { %p898_p12 = scmp.ne.s32.totalorder (!%p293_p9), %s1214_s17, 0 }
  0x2f   : > { %s1463_s13 = smov (!%p331_p10, %s894_s13), 31  ;;  %s1465_s24 = smov (!%p337_p11, %s896_s24), 31 }
  0x30   : > { %s895_s25 = sshll.u32 %s1463_s13, 2  ;;  %s897_s30 = sshll.u32 %s1465_s24, 2 }
  0x31   : > { %s1344_s29 = scalar_lea.vmem %s1446_s1, %s895_s25  ;;  %s1349_s7 = scalar_lea.vmem %s1449_s4, %s897_s30 }
  0x32   : > { %345 = sbr.rel (%p898_p12) target bundleno = 72 (0x48), region = 81 }
  0x37   : > { %v1232_v16 = vmov 0.0  }
  0x38   : > { %346 = vst [vmem:[#allocation2 + $0x30] sm:$0xff] %v1232_v16 }
  0x39   : > { %347 = vst [vmem:[#allocation2] sm:$0xff] %v1232_v16 }
  0x3a   : > { %348 = vst [vmem:[#allocation2 + $0x58] sm:$0xff] %v1232_v16 }
  0x3b   : > { %349 = vst [vmem:[#allocation2 + $0x18] sm:$0xff] %v1232_v16 }
  0x3c   : > { %350 = vst [vmem:[#allocation2 + $0x50] sm:$0xff] %v1232_v16 }
  0x3d   : > { %351 = vst [vmem:[#allocation2 + $0x68] sm:$0xff] %v1232_v16 }
  0x3e   : > { %352 = vst [vmem:[#allocation2 + $0x8] sm:$0xff] %v1232_v16 }
  0x3f   : > { %353 = vst [vmem:[#allocation2 + $0x48] sm:$0xff] %v1232_v16 }
  0x40   : > { %354 = vst [vmem:[#allocation2 + $0x40] sm:$0xff] %v1232_v16 }
  0x41   : > { %355 = vst [vmem:[#allocation2 + $0x20] sm:$0xff] %v1232_v16 }
  0x42   : > { %356 = vst [vmem:[#allocation2 + $0x10] sm:$0xff] %v1232_v16 }
  0x43   : > { %357 = vst [vmem:[#allocation2 + $0x38] sm:$0xff] %v1232_v16 }
  0x44   : > { %358 = vst [vmem:[#allocation2 + $0x60] sm:$0xff] %v1232_v16 }
  0x45   : > { %359 = vst [vmem:[#allocation2 + $0x70] sm:$0xff] %v1232_v16 }
  0x46   : > { %360 = vst [vmem:[#allocation2 + $0x78] sm:$0xff] %v1232_v16 }
  0x47   : > { %361 = vst [vmem:[#allocation2 + $0x28] sm:$0xff] %v1232_v16 }
  0x48 PF: > { %v1014_v17 = vld [vmem:[%s1344_s29 + $0x38] sm:$0xff]  ;;  %v1013_v18 = vld [vmem:[%s1344_s29 + $0x30] sm:$0xff]  ;;  %v1012_v19 = vld [vmem:[%s1344_s29 + $0x28] sm:$0xff]  ;;  %p963_p13 = scmp.ne.s32.totalorder %s1214_s17, 1 }
  0x49   : > { %506 = vmatpush.bf16.msra.mxu0 %v1014_v17  ;;  %1070 = vmatpush.bf16.msra.mxu1 %v1014_v17  ;;  %v1011_v20 = vld [vmem:[%s1344_s29 + $0x20] sm:$0xff]  ;;  %v1010_v21 = vld [vmem:[%s1344_s29 + $0x18] sm:$0xff]  ;;  %v1009_v22 = vld [vmem:[%s1344_s29 + $0x10] sm:$0xff] }
  0x4a   : > { %1071 = vmatpush.bf16.msra.mxu2 %v1014_v17  ;;  %1072 = vmatpush.bf16.msra.mxu3 %v1014_v17  ;;  %v1008_v23 = vld [vmem:[%s1344_s29 + $0x8] sm:$0xff]  ;;  %v1007_v24 = vld [vmem:[%s1344_s29] sm:$0xff]  ;;  %v1001_v26 = vld [vmem:[%s1351_s15 + $0x10] sm:$0xff] }
  0x4b   : > { %v999_v25 = vld [vmem:[%s1351_s15] sm:$0xff]  ;;  %v1005_v28 = vld [vmem:[%s1351_s15 + $0x30] sm:$0xff]  ;;  %v1000_v29 = vld [vmem:[%s1351_s15 + $0x8] sm:$0xff] }
  0x4c   : > { %v1003_v27 = vld [vmem:[%s1351_s15 + $0x20] sm:$0xff]  ;;  %v1002_v30 = vld [vmem:[%s1351_s15 + $0x18] sm:$0xff]  ;;  %v1004_v31 = vld [vmem:[%s1351_s15 + $0x28] sm:$0xff] }
  0x4d   : > { %507 = vmatpush.bf16.msra.mxu0 %v1013_v18  ;;  %1073 = vmatpush.bf16.msra.mxu1 %v1013_v18  ;;  %v1006_v32 = vld [vmem:[%s1351_s15 + $0x38] sm:$0xff]  ;;  %v362_v33 = vld [vmem:[#allocation2 + $0x30] sm:$0xff]  ;;  %v370_v39 = vld [vmem:[#allocation2 + $0x40] sm:$0xff] }
  0x4e   : > { %1074 = vmatpush.bf16.msra.mxu2 %v1013_v18  ;;  %1075 = vmatpush.bf16.msra.mxu3 %v1013_v18  ;;  %v366_v34 = vld [vmem:[#allocation2 + $0x50] sm:$0xff]  ;;  %v374_v40 = vld [vmem:[#allocation2 + $0x60] sm:$0xff]  ;;  %v367_v42 = vld [vmem:[#allocation2 + $0x68] sm:$0xff] }
  0x4f   : > { %v363_v41 = vld [vmem:[#allocation2] sm:$0xff]  ;;  %v375_v52 = vld [vmem:[#allocation2 + $0x70] sm:$0xff]  ;;  %v364_v53 = vld [vmem:[#allocation2 + $0x58] sm:$0xff] }
  0x50   : > { %v371_v51 = vld [vmem:[#allocation2 + $0x20] sm:$0xff]  ;;  %v368_v54 = vld [vmem:[#allocation2 + $0x8] sm:$0xff]  ;;  %v372_v63 = vld [vmem:[#allocation2 + $0x10] sm:$0xff] }
  0x51   : > { %508 = vmatpush.bf16.msra.mxu0 %v1012_v19  ;;  %1076 = vmatpush.bf16.msra.mxu1 %v1012_v19  ;;  %v376_v0 = vld [vmem:[#allocation2 + $0x78] sm:$0xff]  ;;  %v369_v2 = vld [vmem:[#allocation2 + $0x48] sm:$0xff] }
  0x52   : > { %1077 = vmatpush.bf16.msra.mxu2 %v1012_v19  ;;  %1078 = vmatpush.bf16.msra.mxu3 %v1012_v19  ;;  %v365_v1 = vld [vmem:[#allocation2 + $0x18] sm:$0xff]  ;;  %v377_v12 = vld [vmem:[#allocation2 + $0x28] sm:$0xff] }
  0x53   : > { %v373_v11 = vld [vmem:[#allocation2 + $0x38] sm:$0xff] }
  0x55   : > { %509 = vmatpush.bf16.msra.mxu0 %v1011_v20  ;;  %1079 = vmatpush.bf16.msra.mxu1 %v1011_v20 }
  0x56   : > { %1080 = vmatpush.bf16.msra.mxu2 %v1011_v20  ;;  %1081 = vmatpush.bf16.msra.mxu3 %v1011_v20 }
  0x59   : > { %510 = vmatpush.bf16.msra.mxu0 %v1010_v21  ;;  %1082 = vmatpush.bf16.msra.mxu1 %v1010_v21 }
  0x5a   : > { %1083 = vmatpush.bf16.msra.mxu2 %v1010_v21  ;;  %1084 = vmatpush.bf16.msra.mxu3 %v1010_v21 }
  0x5d   : > { %511 = vmatpush.bf16.msra.mxu0 %v1009_v22  ;;  %1085 = vmatpush.bf16.msra.mxu1 %v1009_v22 }
  0x5e   : > { %1086 = vmatpush.bf16.msra.mxu2 %v1009_v22  ;;  %1087 = vmatpush.bf16.msra.mxu3 %v1009_v22 }
  0x61   : > { %512 = vmatpush.bf16.msra.mxu0 %v1008_v23  ;;  %1088 = vmatpush.bf16.msra.mxu1 %v1008_v23 }
  0x62   : > { %1089 = vmatpush.bf16.msra.mxu2 %v1008_v23  ;;  %1090 = vmatpush.bf16.msra.mxu3 %v1008_v23 }
  0x65   : > { %513 = vmatpush.bf16.msra.mxu0 %v1007_v24  ;;  %1091 = vmatpush.bf16.msra.mxu1 %v1007_v24 }
  0x66   : > { %1092 = vmatpush.bf16.msra.mxu2 %v1007_v24  ;;  %1093 = vmatpush.bf16.msra.mxu3 %v1007_v24 }
  0x68   : > { %514 = vmatmul.bf16.vlgmr.msra.gmra.mxu0 %v999_v25  ;;  %524 = vmatmul.bf16.vlgmr.msra.gmra.mxu1 %v1001_v26 }
  0x69   : > { %534 = vmatmul.bf16.vlgmr.msra.gmra.mxu2 %v1003_v27  ;;  %544 = vmatmul.bf16.vlgmr.msra.gmra.mxu3 %v1005_v28 }
  0x78   : > { %519 = vmatmul.bf16.gmra.mxu0 %v1000_v29  ;;  %529 = vmatmul.bf16.gmra.mxu1 %v1002_v30 }
  0x79   : > { %539 = vmatmul.bf16.gmra.mxu2 %v1004_v31  ;;  %549 = vmatmul.bf16.gmra.mxu3 %v1006_v32 }
  0xe5   : > { %v515_v35 = vpop.f32.mrf.mxu0  ;;  %v525_v36 = vpop.f32.mrf.mxu1 }
  0xe6   : > { %v555_v37 = vadd.f32 %v515_v35, %v362_v33  ;;  %v559_v38 = vadd.f32 %v525_v36, %v366_v34 }
  0xe8   : > { %571 = vst [vmem:[#allocation2 + $0x30] sm:$0xff] %v555_v37 }
  0xe9   : > { %575 = vst [vmem:[#allocation2 + $0x50] sm:$0xff] %v559_v38 }
  0xec   : > { %v535_v43 = vpop.f32.mrf.mxu2  ;;  %v545_v44 = vpop.f32.mrf.mxu3 }
  0xed   : > { %v563_v45 = vadd.f32 %v535_v43, %v370_v39  ;;  %v567_v46 = vadd.f32 %v545_v44, %v374_v40  ;;  %v517_v47 = vpop.f32.mrf.mxu0  ;;  %v527_v48 = vpop.f32.mrf.mxu1 }
  0xee   : > { %v556_v49 = vadd.f32 %v517_v47, %v363_v41  ;;  %v560_v50 = vadd.f32 %v527_v48, %v367_v42 }
  0xef   : > { %579 = vst [vmem:[#allocation2 + $0x40] sm:$0xff] %v563_v45 }
  0xf0   : > { %583 = vst [vmem:[#allocation2 + $0x60] sm:$0xff] %v567_v46 }
  0xf1   : > { %572 = vst [vmem:[#allocation2] sm:$0xff] %v556_v49 }
  0xf2   : > { %576 = vst [vmem:[#allocation2 + $0x68] sm:$0xff] %v560_v50 }
  0xf4   : > { %v537_v55 = vpop.f32.mrf.mxu2  ;;  %v547_v56 = vpop.f32.mrf.mxu3 }
  0xf5   : > { %v564_v57 = vadd.f32 %v537_v55, %v371_v51  ;;  %v568_v58 = vadd.f32 %v547_v56, %v375_v52  ;;  %v520_v59 = vpop.f32.mrf.mxu0  ;;  %v530_v60 = vpop.f32.mrf.mxu1 }
  0xf6   : > { %v557_v61 = vadd.f32 %v520_v59, %v364_v53  ;;  %v561_v62 = vadd.f32 %v530_v60, %v368_v54 }
  0xf7   : > { %580 = vst [vmem:[#allocation2 + $0x20] sm:$0xff] %v564_v57 }
  0xf8   : > { %584 = vst [vmem:[#allocation2 + $0x70] sm:$0xff] %v568_v58 }
  0xf9   : > { %573 = vst [vmem:[#allocation2 + $0x58] sm:$0xff] %v557_v61 }
  0xfa   : > { %577 = vst [vmem:[#allocation2 + $0x8] sm:$0xff] %v561_v62 }
  0xfc   : > { %v540_v3 = vpop.f32.mrf.mxu2  ;;  %v550_v4 = vpop.f32.mrf.mxu3 }
  0xfd   : > { %v565_v5 = vadd.f32 %v540_v3, %v372_v63  ;;  %v569_v6 = vadd.f32 %v550_v4, %v376_v0  ;;  %v522_v7 = vpop.f32.mrf.mxu0  ;;  %v532_v8 = vpop.f32.mrf.mxu1 }
  0xfe   : > { %v558_v9 = vadd.f32 %v522_v7, %v365_v1  ;;  %v562_v10 = vadd.f32 %v532_v8, %v369_v2 }
  0xff   : > { %581 = vst [vmem:[#allocation2 + $0x10] sm:$0xff] %v565_v5 }
 0x100   : > { %585 = vst [vmem:[#allocation2 + $0x78] sm:$0xff] %v569_v6 }
 0x101   : > { %574 = vst [vmem:[#allocation2 + $0x18] sm:$0xff] %v558_v9 }
 0x102   : > { %578 = vst [vmem:[#allocation2 + $0x48] sm:$0xff] %v562_v10 }
 0x104   : > { %v542_v13 = vpop.f32.mrf.mxu2  ;;  %v552_v14 = vpop.f32.mrf.mxu3  ;;  %590 = sbr.rel (%p963_p13) target bundleno = 458 (0x1ca), region = 85 }
 0x105   : > { %v566_v15 = vadd.f32 %v542_v13, %v373_v11  ;;  %v570_v16 = vadd.f32 %v552_v14, %v377_v12 }
 0x107   : > { %582 = vst [vmem:[#allocation2 + $0x38] sm:$0xff] %v566_v15 }
 0x108   : > { %586 = vst [vmem:[#allocation2 + $0x28] sm:$0xff] %v570_v16 }
 0x109   : > { %v1022_v17 = vld [vmem:[%s1448_s3 + $0x38] sm:$0xff]  ;;  %v1021_v18 = vld [vmem:[%s1448_s3 + $0x30] sm:$0xff]  ;;  %v1020_v19 = vld [vmem:[%s1448_s3 + $0x28] sm:$0xff] }
 0x10a   : > { %715 = vmatpush.bf16.msra.mxu0 %v1022_v17  ;;  %1094 = vmatpush.bf16.msra.mxu1 %v1022_v17  ;;  %v1019_v20 = vld [vmem:[%s1448_s3 + $0x20] sm:$0xff]  ;;  %v1018_v21 = vld [vmem:[%s1448_s3 + $0x18] sm:$0xff]  ;;  %v1017_v23 = vld [vmem:[%s1448_s3 + $0x10] sm:$0xff] }
 0x10b   : > { %1095 = vmatpush.bf16.msra.mxu2 %v1022_v17  ;;  %1096 = vmatpush.bf16.msra.mxu3 %v1022_v17  ;;  %v1389_v22 = vld [vmem:[%s1447_s2] ss:$0 sm:$0xff]  ;;  %v591_v24 = vld [vmem:[#allocation2 + $0x30] sm:$0xff]  ;;  %v596_v27 = vld [vmem:[#allocation2 + $0x68] sm:$0xff] }
 0x10c   : > { %v592_v25 = vld [vmem:[#allocation2] sm:$0xff]  ;;  %v595_v26 = vld [vmem:[#allocation2 + $0x50] sm:$0xff]  ;;  %v611_v32 = vadd.f32 %v1389_v22, %v591_v24  ;;  %v616_v35 = vadd.f32 %v1389_v22, %v596_v27  ;;  %v1016_v37 = vld [vmem:[%s1448_s3 + $0x8] sm:$0xff] }
 0x10d   : > { %v599_v28 = vld [vmem:[#allocation2 + $0x40] sm:$0xff]  ;;  %v604_v31 = vld [vmem:[#allocation2 + $0x70] sm:$0xff]  ;;  %v612_v33 = vadd.f32 %v1389_v22, %v592_v25  ;;  %v615_v34 = vadd.f32 %v1389_v22, %v595_v26  ;;  %v593_v54 = vld [vmem:[#allocation2 + $0x58] sm:$0xff] }
 0x10e   : > { %716 = vmatpush.bf16.msra.mxu0 %v1021_v18  ;;  %1097 = vmatpush.bf16.msra.mxu1 %v1021_v18  ;;  %v600_v29 = vld [vmem:[#allocation2 + $0x20] sm:$0xff]  ;;  %v619_v36 = vadd.f32 %v1389_v22, %v599_v28  ;;  %v624_v40 = vadd.f32 %v1389_v22, %v604_v31  ;;  %v627_v41 = vmax.f32 %v611_v32, 0.0  ;;  %v632_v44 = vmax.f32 %v616_v35, 0.0  ;;  %v594_v55 = vld [vmem:[#allocation2 + $0x18] sm:$0xff]  ;;  %v597_v56 = vld [vmem:[#allocation2 + $0x8] sm:$0xff] }
 0x10f   : > { %1098 = vmatpush.bf16.msra.mxu2 %v1021_v18  ;;  %1099 = vmatpush.bf16.msra.mxu3 %v1021_v18  ;;  %v603_v30 = vld [vmem:[#allocation2 + $0x60] sm:$0xff]  ;;  %v620_v38 = vadd.f32 %v1389_v22, %v600_v29  ;;  %v628_v42 = vmax.f32 %v612_v33, 0.0  ;;  %v631_v43 = vmax.f32 %v615_v34, 0.0  ;;  %v598_v57 = vld [vmem:[#allocation2 + $0x48] sm:$0xff]  ;;  %v601_v58 = vld [vmem:[#allocation2 + $0x10] sm:$0xff]  ;;  %v613_v62 = vadd.f32 %v1389_v22, %v593_v54 }
 0x110   : > { %v623_v39 = vadd.f32 %v1389_v22, %v603_v30  ;;  %v1015_v45 = vld [vmem:[%s1448_s3] sm:$0xff]  ;;  %v635_v46 = vmax.f32 %v619_v36, 0.0  ;;  %v640_v49 = vmax.f32 %v624_v40, 0.0  ;;  %v602_v59 = vld [vmem:[#allocation2 + $0x38] sm:$0xff]  ;;  %v606_v61 = vld [vmem:[#allocation2 + $0x28] sm:$0xff]  ;;  %v614_v63 = vadd.f32 %v1389_v22, %v594_v55 }
 0x111   : > { %v636_v47 = vmax.f32 %v620_v38, 0.0  ;;  %v643_v50 = vpack.c.bf16 %v628_v42, %v627_v41  ;;  %v645_v51 = vpack.c.bf16 %v632_v44, %v631_v43  ;;  %v605_v60 = vld [vmem:[#allocation2 + $0x78] sm:$0xff]  ;;  %v617_v0 = vadd.f32 %v1389_v22, %v597_v56 }
 0x112   : > { %717 = vmatpush.bf16.msra.mxu0 %v1020_v19  ;;  %1100 = vmatpush.bf16.msra.mxu1 %v1020_v19  ;;  %v639_v48 = vmax.f32 %v623_v39, 0.0  ;;  %v618_v1 = vadd.f32 %v1389_v22, %v598_v57  ;;  %v621_v2 = vadd.f32 %v1389_v22, %v601_v58  ;;  %v622_v3 = vadd.f32 %v1389_v22, %v602_v59 }
 0x113   : > { %1101 = vmatpush.bf16.msra.mxu2 %v1020_v19  ;;  %1102 = vmatpush.bf16.msra.mxu3 %v1020_v19  ;;  %v647_v52 = vpack.c.bf16 %v636_v47, %v635_v46  ;;  %v625_v4 = vadd.f32 %v1389_v22, %v605_v60  ;;  %v626_v5 = vadd.f32 %v1389_v22, %v606_v61  ;;  %v629_v6 = vmax.f32 %v613_v62, 0.0 }
 0x114   : > { %v649_v53 = vpack.c.bf16 %v640_v49, %v639_v48  ;;  %v630_v7 = vmax.f32 %v614_v63, 0.0  ;;  %v633_v8 = vmax.f32 %v617_v0, 0.0  ;;  %v634_v9 = vmax.f32 %v618_v1, 0.0 }
 0x115   : > { %v637_v10 = vmax.f32 %v621_v2, 0.0  ;;  %v638_v11 = vmax.f32 %v622_v3, 0.0  ;;  %v641_v12 = vmax.f32 %v625_v4, 0.0  ;;  %v642_v13 = vmax.f32 %v626_v5, 0.0 }
 0x116   : > { %718 = vmatpush.bf16.msra.mxu0 %v1019_v20  ;;  %1103 = vmatpush.bf16.msra.mxu1 %v1019_v20  ;;  %v644_v14 = vpack.c.bf16 %v630_v7, %v629_v6  ;;  %v646_v15 = vpack.c.bf16 %v634_v9, %v633_v8 }
 0x117   : > { %1104 = vmatpush.bf16.msra.mxu2 %v1019_v20  ;;  %1105 = vmatpush.bf16.msra.mxu3 %v1019_v20  ;;  %v648_v16 = vpack.c.bf16 %v638_v11, %v637_v10  ;;  %v650_v17 = vpack.c.bf16 %v642_v13, %v641_v12 }
 0x11a   : > { %719 = vmatpush.bf16.msra.mxu0 %v1018_v21  ;;  %1106 = vmatpush.bf16.msra.mxu1 %v1018_v21 }
 0x11b   : > { %1107 = vmatpush.bf16.msra.mxu2 %v1018_v21  ;;  %1108 = vmatpush.bf16.msra.mxu3 %v1018_v21 }
 0x11e   : > { %720 = vmatpush.bf16.msra.mxu0 %v1017_v23  ;;  %1109 = vmatpush.bf16.msra.mxu1 %v1017_v23 }
 0x11f   : > { %1110 = vmatpush.bf16.msra.mxu2 %v1017_v23  ;;  %1111 = vmatpush.bf16.msra.mxu3 %v1017_v23 }
 0x122   : > { %721 = vmatpush.bf16.msra.mxu0 %v1016_v37  ;;  %1112 = vmatpush.bf16.msra.mxu1 %v1016_v37 }
 0x123   : > { %1113 = vmatpush.bf16.msra.mxu2 %v1016_v37  ;;  %1114 = vmatpush.bf16.msra.mxu3 %v1016_v37 }
 0x126   : > { %722 = vmatpush.bf16.msra.mxu0 %v1015_v45  ;;  %1115 = vmatpush.bf16.msra.mxu1 %v1015_v45 }
 0x127   : > { %1116 = vmatpush.bf16.msra.mxu2 %v1015_v45  ;;  %1117 = vmatpush.bf16.msra.mxu3 %v1015_v45 }
 0x129   : > { %723 = vmatmul.bf16.vlgmr.msra.gmra.mxu0 %v643_v50  ;;  %733 = vmatmul.bf16.vlgmr.msra.gmra.mxu1 %v645_v51 }
 0x12a   : > { %743 = vmatmul.bf16.vlgmr.msra.gmra.mxu2 %v647_v52  ;;  %753 = vmatmul.bf16.vlgmr.msra.gmra.mxu3 %v649_v53 }
 0x139   : > { %728 = vmatmul.bf16.gmra.mxu0 %v644_v14  ;;  %738 = vmatmul.bf16.gmra.mxu1 %v646_v15 }
 0x13a   : > { %748 = vmatmul.bf16.gmra.mxu2 %v648_v16  ;;  %758 = vmatmul.bf16.gmra.mxu3 %v650_v17 }
 0x1a6   : > { %v724_v18 = vpop.f32.mrf.mxu0  ;;  %v734_v19 = vpop.f32.mrf.mxu1 }
 0x1ad   : > { %v744_v20 = vpop.f32.mrf.mxu2  ;;  %v754_v21 = vpop.f32.mrf.mxu3 }
 0x1ae   : > { %v726_v22 = vpop.f32.mrf.mxu0  ;;  %v736_v23 = vpop.f32.mrf.mxu1 }
 0x1af   : > { %v1026_v24 = vpack.c.bf16 %v726_v22, %v724_v18  ;;  %v1036_v25 = vpack.c.bf16 %v736_v23, %v734_v19 }
 0x1b1   : > { %1027 = vst [vmem:[%s1349_s7] sm:$0xff] %v1026_v24  }
 0x1b2   : > { %1064 = vst [vmem:[%s1349_s7 + $0x10] sm:$0xff] %v1036_v25  }
 0x1b5   : > { %v746_v26 = vpop.f32.mrf.mxu2  ;;  %v756_v27 = vpop.f32.mrf.mxu3 }
 0x1b6   : > { %v1046_v28 = vpack.c.bf16 %v746_v26, %v744_v20  ;;  %v1056_v29 = vpack.c.bf16 %v756_v27, %v754_v21  ;;  %v729_v30 = vpop.f32.mrf.mxu0  ;;  %v739_v31 = vpop.f32.mrf.mxu1 }
 0x1b8   : > { %1066 = vst [vmem:[%s1349_s7 + $0x20] sm:$0xff] %v1046_v28  }
 0x1b9   : > { %1068 = vst [vmem:[%s1349_s7 + $0x30] sm:$0xff] %v1056_v29  }
 0x1bd   : > { %v749_v32 = vpop.f32.mrf.mxu2  ;;  %v759_v33 = vpop.f32.mrf.mxu3 }
 0x1be   : > { %v731_v34 = vpop.f32.mrf.mxu0  ;;  %v741_v35 = vpop.f32.mrf.mxu1 }
 0x1bf   : > { %v1031_v36 = vpack.c.bf16 %v731_v34, %v729_v30  ;;  %v1041_v37 = vpack.c.bf16 %v741_v35, %v739_v31 }
 0x1c1   : > { %1063 = vst [vmem:[%s1349_s7 + $0x8] sm:$0xff] %v1031_v36  }
 0x1c2   : > { %1065 = vst [vmem:[%s1349_s7 + $0x18] sm:$0xff] %v1041_v37  }
 0x1c5   : > { %v751_v38 = vpop.f32.mrf.mxu2  ;;  %v761_v39 = vpop.f32.mrf.mxu3 }
 0x1c6   : > { %v1051_v40 = vpack.c.bf16 %v751_v38, %v749_v32  ;;  %v1061_v41 = vpack.c.bf16 %v761_v39, %v759_v33 }
 0x1c8   : > { %1067 = vst [vmem:[%s1349_s7 + $0x28] sm:$0xff] %v1051_v40  }
 0x1c9   : > { %1069 = vst [vmem:[%s1349_s7 + $0x38] sm:$0xff] %v1061_v41  }
 0x1ca PF: > { %s14_s21 = sadd.s32 1, %s1230_s21   ;;  %s1450_s15 = smov %s1210_s16 }
 0x1cb   : > { %p11_p0 = scmp.ge.s32.totalorder %s14_s21, 6   ;;  %s1451_s16 = smov %s1309_s28 }
 0x1cc   : > { %s1452_s17 = smov %s1222_s19  ;;  %s1453_s18 = smov %s1226_s20 }
 0x1cd   : > { %s1454_s19 = smov %s1457_s22  ;;  %s1455_s20 = smov %s1461_s23 }
 0x1ce   :  { %13 = sbr.rel (!%p11_p0) target bundleno = 4 (0x4), region = 123 }

// kernel: travel_gnn_forward.7
= control target key start
LH: loop header
LB: loop body
LE: loop exit
PB: predicated region body
PF: predicated region fallthrough
CT: control target
= control target key end

     0   :  { %s143_s1 = inlined_call_operand.vmem [shape: f32[128,128], index: 1, kind: input, shape index: {}]   ;;  %s144_s2 = inlined_call_operand.vmem [shape: f32[1,128], index: 2, kind: input, shape index: {}]   ;;  %s145_s0 = inlined_call_operand.vmem [shape: f32[2,8,128], index: 0, kind: input, shape index: {}]   ;;  %s146_s3 = inlined_call_operand.vmem [shape: f32[8,128], index: 3, kind: output, shape index: {}]  }
   0x1   :  { %v32_v0 = vld [vmem:[%s143_s1 + $0x78] sm:$0xff]  ;;  %v31_v1 = vld [vmem:[%s143_s1 + $0x70] sm:$0xff]  ;;  %v30_v2 = vld [vmem:[%s143_s1 + $0x68] sm:$0xff] }
   0x2   :  { %37 = vmatpush.msra.mxu0 %v32_v0  ;;  %v29_v3 = vld [vmem:[%s143_s1 + $0x60] sm:$0xff]  ;;  %v28_v4 = vld [vmem:[%s143_s1 + $0x58] sm:$0xff]  ;;  %v27_v5 = vld [vmem:[%s143_s1 + $0x50] sm:$0xff] }
   0x3   :  { %v26_v6 = vld [vmem:[%s143_s1 + $0x48] sm:$0xff]  ;;  %v25_v7 = vld [vmem:[%s143_s1 + $0x40] sm:$0xff]  ;;  %v24_v8 = vld [vmem:[%s143_s1 + $0x38] sm:$0xff] }
   0x4   :  { %38 = vmatpush.msra.mxu0 %v31_v1  ;;  %v23_v9 = vld [vmem:[%s143_s1 + $0x30] sm:$0xff]  ;;  %v22_v10 = vld [vmem:[%s143_s1 + $0x28] sm:$0xff]  ;;  %v21_v11 = vld [vmem:[%s143_s1 + $0x20] sm:$0xff] }
   0x5   :  { %v20_v12 = vld [vmem:[%s143_s1 + $0x18] sm:$0xff]  ;;  %v19_v13 = vld [vmem:[%s143_s1 + $0x10] sm:$0xff]  ;;  %v14_v14 = vld [vmem:[%s145_s0] sm:$0xff] }
   0x6   :  { %39 = vmatpush.msra.mxu0 %v30_v2  ;;  %v15_v15 = vld [vmem:[%s145_s0 + $0x8] sm:$0xff]  ;;  %v17_v17 = vld [vmem:[%s143_s1] sm:$0xff] }
   0x7   :  { %v18_v16 = vld [vmem:[%s143_s1 + $0x8] sm:$0xff]  ;;  %v16_v18 = vadd.f32 %v15_v15, %v14_v14  ;;  %v62_v19 = vld [vmem:[%s144_s2] ss:$0 sm:$0xff] }
   0x8   :  { %40 = vmatpush.msra.mxu0 %v29_v3 }
   0xa   :  { %41 = vmatpush.msra.mxu0 %v28_v4 }
   0xc   :  { %42 = vmatpush.msra.mxu0 %v27_v5 }
   0xe   :  { %43 = vmatpush.msra.mxu0 %v26_v6 }
  0x10   :  { %44 = vmatpush.msra.mxu0 %v25_v7 }
  0x12   :  { %45 = vmatpush.msra.mxu0 %v24_v8 }
  0x14   :  { %46 = vmatpush.msra.mxu0 %v23_v9 }
  0x16   :  { %47 = vmatpush.msra.mxu0 %v22_v10 }
  0x18   :  { %48 = vmatpush.msra.mxu0 %v21_v11 }
  0x1a   :  { %49 = vmatpush.msra.mxu0 %v20_v12 }
  0x1c   :  { %50 = vmatpush.msra.mxu0 %v19_v13 }
  0x1e   :  { %51 = vmatpush.msra.mxu0 %v18_v16 }
  0x20   :  { %52 = vmatpush.msra.mxu0 %v17_v17 }
  0x21   :  { %53 = vmatmul.f32.vlgmr.msra.gmra.mxu0 %v16_v18 }
  0x9e   :  { %v54_v20 = vpop.f32.mrf.mxu0 }
  0x9f   :  { %v55_v21 = vadd.f32 %v62_v19, %v54_v20 }
  0xa1   :  { %57 = vst [vmem:[%s146_s3] sm:$0xff] %v55_v21 }

// kernel: travel_gnn_forward.6
= control target key start
LH: loop header
LB: loop body
LE: loop exit
PB: predicated region body
PF: predicated region fallthrough
CT: control target
= control target key end

     0   :  { %s1022_s15 = smov 0   ;;  %s1024_s16 = smov 0   ;;  %s1167_s0 = inlined_call_operand.vmem [shape: bf16[256,256], index: 0, kind: input, shape index: {}]   ;;  %s1168_s1 = inlined_call_operand.vmem [shape: bf16[256,128], index: 1, kind: input, shape index: {}]   ;;  %s1169_s2 = inlined_call_operand.vmem [shape: f32[1,128], index: 2, kind: input, shape index: {}]   ;;  %s1170_s3 = inlined_call_operand.vmem [shape: f32[8,256], index: 3, kind: input, shape index: {}]   ;;  %s1171_s4 = inlined_call_operand.vmem [shape: f32[2,8,128], index: 4, kind: output, shape index: {}]  }
   0x1   :  { %s1026_s17 = smov 0   ;;  %s1028_s18 = smov 0  }
   0x2   :  { %s1030_s19 = smov 0   ;;  %s1032_s20 = smov 0  }
   0x3   :  { %s1034_s21 = smov 0  }
   0x4 LB: > { %s23_s22 = sadd.s32 1, %s986_s19  ;;  %s26_s23 = sadd.s32 1, %s990_s20  ;;  %s994_s21 = sphi %s1034_s21, %s14_s21   ;;  %s990_s20 = sphi %s1032_s20, %s1177_s20   ;;  %s986_s19 = sphi %s1030_s19, %s1176_s19   ;;  %s982_s18 = sphi %s1028_s18, %s1175_s18   ;;  %s978_s17 = sphi %s1026_s17, %s1174_s17   ;;  %s974_s16 = sphi %s1024_s16, %s1173_s16   ;;  %s970_s15 = sphi %s1022_s15, %s1172_s15  }
   0x5   : > { %p24_p0 = scmp.ge.s32.totalorder %s23_s22, 2  ;;  %p42_p1 = scmp.ne.s32.totalorder %s974_s16, %s970_s15 }
   0x6   : > { %p43_p2 = scmp.eq.s32.totalorder %s994_s21, 0  ;;  %s35_s27 = sadd.s32 1, %s974_s16 }
   0x7   : > { %s1179_s22 = smov (%p24_p0, %s23_s22), 0  ;;  %s1181_s23 = smov (!%p24_p0, %s26_s23), %s990_s20 }
   0x8   : > { %p44_p3 = por %p43_p2, %p42_p1  ;;  %p28_p4 = scmp.ge.s32.totalorder %s1181_s23, 2 }
   0x9   : > { %s31_s24 = ssub.s32 %s986_s19, %s1179_s22  ;;  %p762_p6 = scmp.ge.s32.totalorder %s994_s21, 4 }
   0xa   : > { %s1183_s23 = smov (%p28_p4, %s1181_s23), 0 }
   0xb   : > { %s30_s25 = ssub.s32 %s990_s20, %s1183_s23  ;;  %170 = sbr.rel (%p762_p6) target bundleno = 38 (0x26), region = 20 }
   0xc   : > { %s32_s26 = sor.u32 %s31_s24, %s30_s25 }
   0xd   : > { %p33_p5 = scmp.eq.s32.totalorder %s32_s26, 0 }
   0xf   : > { %s1073_s28 = scalar_select %p33_p5, %s974_s16, %s35_s27  }
  0x10   : > { %173 = sbr.rel (!%p44_p3) target bundleno = 38 (0x26), region = 24  ;;  %s175_s29 = sand.u32 (%p44_p3), 1, %s974_s16  }
  0x11   : > { %s841_s30 = sshll.u32 (%p44_p3), %s990_s20, 5  ;;  %s763_s5 = sshll.u32 (%p44_p3), %s175_s29, 6 }
  0x12   : > { %s180_s6 = sadd.s32 (%p44_p3), %s986_s19, %s841_s30  ;;  %s177_s11 = scalar_lea.vmem (%p44_p3), [#allocation3], %s763_s5 }
  0x13   : > { %s766_s7 = sshll.u32 (%p44_p3), %s180_s6, 2 }
  0x14   : > { %s1082_s10 = scalar_lea.vmem (%p44_p3), %s1167_s0, %s766_s7 }
  0x15   : > { %v199_v0 = vld [vmem:[%s1082_s10] sm:$0xf]  ;;  %v201_v1 = vld [vmem:[%s1082_s10 + $0x8] sm:$0xf]  ;;  %v203_v2 = vld [vmem:[%s1082_s10 + $0x10] sm:$0xf] }
  0x16   : > { %200 = vst [vmem:[%s177_s11] sm:$0xf] %v199_v0  ;;  %v205_v3 = vld [vmem:[%s1082_s10 + $0x18] sm:$0xf]  ;;  %v207_v4 = vld [vmem:[%s1082_s10 + $0x20] sm:$0xf] }
  0x17   : > { %202 = vst [vmem:[%s177_s11 + $0x4] sm:$0xf] %v201_v1  ;;  %v209_v5 = vld [vmem:[%s1082_s10 + $0x28] sm:$0xf]  ;;  %v211_v6 = vld [vmem:[%s1082_s10 + $0x30] sm:$0xf] }
  0x18   : > { %204 = vst [vmem:[%s177_s11 + $0x8] sm:$0xf] %v203_v2  ;;  %v213_v7 = vld [vmem:[%s1082_s10 + $0x38] sm:$0xf]  ;;  %v215_v8 = vld [vmem:[%s1082_s10 + $0x40] sm:$0xf] }
  0x19   : > { %206 = vst [vmem:[%s177_s11 + $0xc] sm:$0xf] %v205_v3  ;;  %v217_v9 = vld [vmem:[%s1082_s10 + $0x48] sm:$0xf]  ;;  %v219_v10 = vld [vmem:[%s1082_s10 + $0x50] sm:$0xf] }
  0x1a   : > { %208 = vst [vmem:[%s177_s11 + $0x10] sm:$0xf] %v207_v4  ;;  %v221_v11 = vld [vmem:[%s1082_s10 + $0x58] sm:$0xf]  ;;  %v223_v12 = vld [vmem:[%s1082_s10 + $0x60] sm:$0xf] }
  0x1b   : > { %210 = vst [vmem:[%s177_s11 + $0x14] sm:$0xf] %v209_v5  ;;  %v225_v13 = vld [vmem:[%s1082_s10 + $0x68] sm:$0xf]  ;;  %v227_v14 = vld [vmem:[%s1082_s10 + $0x70] sm:$0xf] }
  0x1c   : > { %212 = vst [vmem:[%s177_s11 + $0x18] sm:$0xf] %v211_v6  ;;  %v229_v15 = vld [vmem:[%s1082_s10 + $0x78] sm:$0xf] }
  0x1d   : > { %214 = vst [vmem:[%s177_s11 + $0x1c] sm:$0xf] %v213_v7 }
  0x1e   : > { %216 = vst [vmem:[%s177_s11 + $0x20] sm:$0xf] %v215_v8 }
  0x1f   : > { %218 = vst [vmem:[%s177_s11 + $0x24] sm:$0xf] %v217_v9 }
  0x20   : > { %220 = vst [vmem:[%s177_s11 + $0x28] sm:$0xf] %v219_v10 }
  0x21   : > { %222 = vst [vmem:[%s177_s11 + $0x2c] sm:$0xf] %v221_v11 }
  0x22   : > { %224 = vst [vmem:[%s177_s11 + $0x30] sm:$0xf] %v223_v12 }
  0x23   : > { %226 = vst [vmem:[%s177_s11 + $0x34] sm:$0xf] %v225_v13 }
  0x24   : > { %228 = vst [vmem:[%s177_s11 + $0x38] sm:$0xf] %v227_v14 }
  0x25   : > { %230 = vst [vmem:[%s177_s11 + $0x3c] sm:$0xf] %v229_v15 }
  0x26 PF: > { %p767_p7 = scmp.ge.s32.totalorder %s994_s21, 1  ;;  %p301_p8 = scmp.lt.s32.totalorder %s994_s21, 5 }
  0x28   : > { %p302_p9 = pnand %p767_p7, %p301_p8 }
  0x29   : > { %s308_s12 = sand.u32 (!%p302_p9), 1, %s970_s15   ;;  %s769_s13 = sshll.u32 (!%p302_p9), %s978_s17, 4 }
  0x2a   : > { %305 = sbr.rel (%p302_p9) target bundleno = 432 (0x1b0), region = 73  ;;  %s768_s14 = sshll.u32 (!%p302_p9), %s308_s12, 6 }
  0x2b   : > { %p343_p10 = scmp.lt.s32.totalorder (!%p302_p9), %s769_s13, 31  ;;  %p348_p11 = scmp.lt.s32.totalorder (!%p302_p9), %s982_s18, 1 }
  0x2c   : > { %s1121_s9 = scalar_lea.vmem (!%p302_p9), [#allocation3], %s768_s14  ;;  %p773_p12 = scmp.ne.s32.totalorder (!%p302_p9), %s978_s17, 0 }
  0x2f   : > { %s1185_s13 = smov (!%p343_p10, %s769_s13), 31  ;;  %s1187_s18 = smov (!%p348_p11, %s982_s18), 1 }
  0x30   : > { %s770_s24 = sshll.u32 %s1185_s13, 2  ;;  %s771_s29 = sshll.u32 %s1187_s18, 3 }
  0x31   : > { %s1109_s27 = scalar_lea.vmem %s1168_s1, %s770_s24  ;;  %s1114_s6 = scalar_lea.vmem %s1170_s3, %s771_s29 }
  0x32   : > { %s1119_s8 = scalar_lea.vmem %s1171_s4, %s771_s29  ;;  %359 = sbr.rel (%p773_p12) target bundleno = 72 (0x48), region = 81 }
  0x37   : > { %v996_v16 = vmov 0.0  }
  0x38   : > { %360 = vst [vmem:[#allocation2 + $0x30] sm:$0xff] %v996_v16 }
  0x39   : > { %361 = vst [vmem:[#allocation2] sm:$0xff] %v996_v16 }
  0x3a   : > { %362 = vst [vmem:[#allocation2 + $0x58] sm:$0xff] %v996_v16 }
  0x3b   : > { %363 = vst [vmem:[#allocation2 + $0x18] sm:$0xff] %v996_v16 }
  0x3c   : > { %364 = vst [vmem:[#allocation2 + $0x50] sm:$0xff] %v996_v16 }
  0x3d   : > { %365 = vst [vmem:[#allocation2 + $0x68] sm:$0xff] %v996_v16 }
  0x3e   : > { %366 = vst [vmem:[#allocation2 + $0x8] sm:$0xff] %v996_v16 }
  0x3f   : > { %367 = vst [vmem:[#allocation2 + $0x48] sm:$0xff] %v996_v16 }
  0x40   : > { %368 = vst [vmem:[#allocation2 + $0x40] sm:$0xff] %v996_v16 }
  0x41   : > { %369 = vst [vmem:[#allocation2 + $0x20] sm:$0xff] %v996_v16 }
  0x42   : > { %370 = vst [vmem:[#allocation2 + $0x10] sm:$0xff] %v996_v16 }
  0x43   : > { %371 = vst [vmem:[#allocation2 + $0x38] sm:$0xff] %v996_v16 }
  0x44   : > { %372 = vst [vmem:[#allocation2 + $0x60] sm:$0xff] %v996_v16 }
  0x45   : > { %373 = vst [vmem:[#allocation2 + $0x70] sm:$0xff] %v996_v16 }
  0x46   : > { %374 = vst [vmem:[#allocation2 + $0x78] sm:$0xff] %v996_v16 }
  0x47   : > { %375 = vst [vmem:[#allocation2 + $0x28] sm:$0xff] %v996_v16 }
  0x48 PF: > { %v857_v17 = vld [vmem:[%s1109_s27 + $0x38] sm:$0xff]  ;;  %v856_v18 = vld [vmem:[%s1109_s27 + $0x30] sm:$0xff]  ;;  %v855_v19 = vld [vmem:[%s1109_s27 + $0x28] sm:$0xff]  ;;  %p838_p13 = scmp.ne.s32.totalorder %s978_s17, 1 }
  0x49   : > { %520 = vmatpush.bf16.msra.mxu0 %v857_v17  ;;  %858 = vmatpush.bf16.msra.mxu1 %v857_v17  ;;  %v854_v20 = vld [vmem:[%s1109_s27 + $0x20] sm:$0xff]  ;;  %v853_v21 = vld [vmem:[%s1109_s27 + $0x18] sm:$0xff]  ;;  %v852_v22 = vld [vmem:[%s1109_s27 + $0x10] sm:$0xff] }
  0x4a   : > { %859 = vmatpush.bf16.msra.mxu2 %v857_v17  ;;  %860 = vmatpush.bf16.msra.mxu3 %v857_v17  ;;  %v851_v23 = vld [vmem:[%s1109_s27 + $0x8] sm:$0xff]  ;;  %v850_v24 = vld [vmem:[%s1109_s27] sm:$0xff]  ;;  %v844_v26 = vld [vmem:[%s1121_s9 + $0x10] sm:$0xff] }
  0x4b   : > { %v842_v25 = vld [vmem:[%s1121_s9] sm:$0xff]  ;;  %v848_v28 = vld [vmem:[%s1121_s9 + $0x30] sm:$0xff]  ;;  %v843_v29 = vld [vmem:[%s1121_s9 + $0x8] sm:$0xff] }
  0x4c   : > { %v846_v27 = vld [vmem:[%s1121_s9 + $0x20] sm:$0xff]  ;;  %v845_v30 = vld [vmem:[%s1121_s9 + $0x18] sm:$0xff]  ;;  %v847_v31 = vld [vmem:[%s1121_s9 + $0x28] sm:$0xff] }
  0x4d   : > { %521 = vmatpush.bf16.msra.mxu0 %v856_v18  ;;  %861 = vmatpush.bf16.msra.mxu1 %v856_v18  ;;  %v849_v32 = vld [vmem:[%s1121_s9 + $0x38] sm:$0xff]  ;;  %v376_v33 = vld [vmem:[#allocation2 + $0x30] sm:$0xff]  ;;  %v384_v39 = vld [vmem:[#allocation2 + $0x40] sm:$0xff] }
  0x4e   : > { %862 = vmatpush.bf16.msra.mxu2 %v856_v18  ;;  %863 = vmatpush.bf16.msra.mxu3 %v856_v18  ;;  %v380_v34 = vld [vmem:[#allocation2 + $0x50] sm:$0xff]  ;;  %v388_v40 = vld [vmem:[#allocation2 + $0x60] sm:$0xff]  ;;  %v381_v42 = vld [vmem:[#allocation2 + $0x68] sm:$0xff] }
  0x4f   : > { %v377_v41 = vld [vmem:[#allocation2] sm:$0xff]  ;;  %v389_v52 = vld [vmem:[#allocation2 + $0x70] sm:$0xff]  ;;  %v378_v53 = vld [vmem:[#allocation2 + $0x58] sm:$0xff] }
  0x50   : > { %v385_v51 = vld [vmem:[#allocation2 + $0x20] sm:$0xff]  ;;  %v382_v54 = vld [vmem:[#allocation2 + $0x8] sm:$0xff]  ;;  %v386_v63 = vld [vmem:[#allocation2 + $0x10] sm:$0xff] }
  0x51   : > { %522 = vmatpush.bf16.msra.mxu0 %v855_v19  ;;  %864 = vmatpush.bf16.msra.mxu1 %v855_v19  ;;  %v390_v0 = vld [vmem:[#allocation2 + $0x78] sm:$0xff]  ;;  %v383_v2 = vld [vmem:[#allocation2 + $0x48] sm:$0xff] }
  0x52   : > { %865 = vmatpush.bf16.msra.mxu2 %v855_v19  ;;  %866 = vmatpush.bf16.msra.mxu3 %v855_v19  ;;  %v379_v1 = vld [vmem:[#allocation2 + $0x18] sm:$0xff]  ;;  %v391_v12 = vld [vmem:[#allocation2 + $0x28] sm:$0xff] }
  0x53   : > { %v387_v11 = vld [vmem:[#allocation2 + $0x38] sm:$0xff] }
  0x55   : > { %523 = vmatpush.bf16.msra.mxu0 %v854_v20  ;;  %867 = vmatpush.bf16.msra.mxu1 %v854_v20 }
  0x56   : > { %868 = vmatpush.bf16.msra.mxu2 %v854_v20  ;;  %869 = vmatpush.bf16.msra.mxu3 %v854_v20 }
  0x59   : > { %524 = vmatpush.bf16.msra.mxu0 %v853_v21  ;;  %870 = vmatpush.bf16.msra.mxu1 %v853_v21 }
  0x5a   : > { %871 = vmatpush.bf16.msra.mxu2 %v853_v21  ;;  %872 = vmatpush.bf16.msra.mxu3 %v853_v21 }
  0x5d   : > { %525 = vmatpush.bf16.msra.mxu0 %v852_v22  ;;  %873 = vmatpush.bf16.msra.mxu1 %v852_v22 }
  0x5e   : > { %874 = vmatpush.bf16.msra.mxu2 %v852_v22  ;;  %875 = vmatpush.bf16.msra.mxu3 %v852_v22 }
  0x61   : > { %526 = vmatpush.bf16.msra.mxu0 %v851_v23  ;;  %876 = vmatpush.bf16.msra.mxu1 %v851_v23 }
  0x62   : > { %877 = vmatpush.bf16.msra.mxu2 %v851_v23  ;;  %878 = vmatpush.bf16.msra.mxu3 %v851_v23 }
  0x65   : > { %527 = vmatpush.bf16.msra.mxu0 %v850_v24  ;;  %879 = vmatpush.bf16.msra.mxu1 %v850_v24 }
  0x66   : > { %880 = vmatpush.bf16.msra.mxu2 %v850_v24  ;;  %881 = vmatpush.bf16.msra.mxu3 %v850_v24 }
  0x68   : > { %528 = vmatmul.bf16.vlgmr.msra.gmra.mxu0 %v842_v25  ;;  %538 = vmatmul.bf16.vlgmr.msra.gmra.mxu1 %v844_v26 }
  0x69   : > { %548 = vmatmul.bf16.vlgmr.msra.gmra.mxu2 %v846_v27  ;;  %558 = vmatmul.bf16.vlgmr.msra.gmra.mxu3 %v848_v28 }
  0x78   : > { %533 = vmatmul.bf16.gmra.mxu0 %v843_v29  ;;  %543 = vmatmul.bf16.gmra.mxu1 %v845_v30 }
  0x79   : > { %553 = vmatmul.bf16.gmra.mxu2 %v847_v31  ;;  %563 = vmatmul.bf16.gmra.mxu3 %v849_v32 }
  0xe5   : > { %v529_v35 = vpop.f32.mrf.mxu0  ;;  %v539_v36 = vpop.f32.mrf.mxu1 }
  0xe6   : > { %v569_v37 = vadd.f32 %v529_v35, %v376_v33  ;;  %v573_v38 = vadd.f32 %v539_v36, %v380_v34 }
  0xe8   : > { %585 = vst [vmem:[#allocation2 + $0x30] sm:$0xff] %v569_v37 }
  0xe9   : > { %589 = vst [vmem:[#allocation2 + $0x50] sm:$0xff] %v573_v38 }
  0xec   : > { %v549_v43 = vpop.f32.mrf.mxu2  ;;  %v559_v44 = vpop.f32.mrf.mxu3 }
  0xed   : > { %v577_v45 = vadd.f32 %v549_v43, %v384_v39  ;;  %v581_v46 = vadd.f32 %v559_v44, %v388_v40  ;;  %v531_v47 = vpop.f32.mrf.mxu0  ;;  %v541_v48 = vpop.f32.mrf.mxu1 }
  0xee   : > { %v570_v49 = vadd.f32 %v531_v47, %v377_v41  ;;  %v574_v50 = vadd.f32 %v541_v48, %v381_v42 }
  0xef   : > { %593 = vst [vmem:[#allocation2 + $0x40] sm:$0xff] %v577_v45 }
  0xf0   : > { %597 = vst [vmem:[#allocation2 + $0x60] sm:$0xff] %v581_v46 }
  0xf1   : > { %586 = vst [vmem:[#allocation2] sm:$0xff] %v570_v49 }
  0xf2   : > { %590 = vst [vmem:[#allocation2 + $0x68] sm:$0xff] %v574_v50 }
  0xf4   : > { %v551_v55 = vpop.f32.mrf.mxu2  ;;  %v561_v56 = vpop.f32.mrf.mxu3 }
  0xf5   : > { %v578_v57 = vadd.f32 %v551_v55, %v385_v51  ;;  %v582_v58 = vadd.f32 %v561_v56, %v389_v52  ;;  %v534_v59 = vpop.f32.mrf.mxu0  ;;  %v544_v60 = vpop.f32.mrf.mxu1 }
  0xf6   : > { %v571_v61 = vadd.f32 %v534_v59, %v378_v53  ;;  %v575_v62 = vadd.f32 %v544_v60, %v382_v54 }
  0xf7   : > { %594 = vst [vmem:[#allocation2 + $0x20] sm:$0xff] %v578_v57 }
  0xf8   : > { %598 = vst [vmem:[#allocation2 + $0x70] sm:$0xff] %v582_v58 }
  0xf9   : > { %587 = vst [vmem:[#allocation2 + $0x58] sm:$0xff] %v571_v61 }
  0xfa   : > { %591 = vst [vmem:[#allocation2 + $0x8] sm:$0xff] %v575_v62 }
  0xfc   : > { %v554_v3 = vpop.f32.mrf.mxu2  ;;  %v564_v4 = vpop.f32.mrf.mxu3 }
  0xfd   : > { %v579_v5 = vadd.f32 %v554_v3, %v386_v63  ;;  %v583_v6 = vadd.f32 %v564_v4, %v390_v0  ;;  %v536_v7 = vpop.f32.mrf.mxu0  ;;  %v546_v8 = vpop.f32.mrf.mxu1 }
  0xfe   : > { %v572_v9 = vadd.f32 %v536_v7, %v379_v1  ;;  %v576_v10 = vadd.f32 %v546_v8, %v383_v2 }
  0xff   : > { %595 = vst [vmem:[#allocation2 + $0x10] sm:$0xff] %v579_v5 }
 0x100   : > { %599 = vst [vmem:[#allocation2 + $0x78] sm:$0xff] %v583_v6 }
 0x101   : > { %588 = vst [vmem:[#allocation2 + $0x18] sm:$0xff] %v572_v9 }
 0x102   : > { %592 = vst [vmem:[#allocation2 + $0x48] sm:$0xff] %v576_v10 }
 0x104   : > { %v556_v13 = vpop.f32.mrf.mxu2  ;;  %v566_v14 = vpop.f32.mrf.mxu3  ;;  %604 = sbr.rel (%p838_p13) target bundleno = 432 (0x1b0), region = 85 }
 0x105   : > { %v580_v15 = vadd.f32 %v556_v13, %v387_v11  ;;  %v584_v16 = vadd.f32 %v566_v14, %v391_v12 }
 0x107   : > { %596 = vst [vmem:[#allocation2 + $0x38] sm:$0xff] %v580_v15 }
 0x108   : > { %600 = vst [vmem:[#allocation2 + $0x28] sm:$0xff] %v584_v16 }
 0x109   : > { %v939_v18 = vld [vmem:[%s1169_s2] ss:$0 sm:$0xff]  ;;  %v619_v19 = vld [vmem:[#allocation2 + $0x78] sm:$0xff]  ;;  %v618_v20 = vld [vmem:[#allocation2 + $0x70] sm:$0xff] }
 0x10a   : > { %v639_v22 = vadd.f32 %v939_v18, %v619_v19  ;;  %v617_v23 = vld [vmem:[#allocation2 + $0x60] sm:$0xff]  ;;  %v638_v24 = vadd.f32 %v939_v18, %v618_v20  ;;  %v615_v27 = vld [vmem:[#allocation2 + $0x10] sm:$0xff]  ;;  %v612_v33 = vld [vmem:[#allocation2 + $0x48] sm:$0xff] }
 0x10b   : > { %v637_v26 = vadd.f32 %v939_v18, %v617_v23  ;;  %v614_v29 = vld [vmem:[#allocation2 + $0x20] sm:$0xff]  ;;  %v635_v30 = vadd.f32 %v939_v18, %v615_v27  ;;  %v611_v35 = vld [vmem:[#allocation2 + $0x8] sm:$0xff]  ;;  %v632_v36 = vadd.f32 %v939_v18, %v612_v33  ;;  %v609_v39 = vld [vmem:[#allocation2 + $0x50] sm:$0xff] }
 0x10c   : > { %v613_v31 = vld [vmem:[#allocation2 + $0x40] sm:$0xff]  ;;  %v634_v32 = vadd.f32 %v939_v18, %v614_v29  ;;  %v610_v37 = vld [vmem:[#allocation2 + $0x68] sm:$0xff]  ;;  %v631_v38 = vadd.f32 %v939_v18, %v611_v35  ;;  %v608_v41 = vld [vmem:[#allocation2 + $0x18] sm:$0xff]  ;;  %v629_v42 = vadd.f32 %v939_v18, %v609_v39 }
 0x10d   : > { %v633_v34 = vadd.f32 %v939_v18, %v613_v31  ;;  %v630_v40 = vadd.f32 %v939_v18, %v610_v37  ;;  %v607_v43 = vld [vmem:[#allocation2 + $0x58] sm:$0xff]  ;;  %v628_v44 = vadd.f32 %v939_v18, %v608_v41  ;;  %v606_v45 = vld [vmem:[#allocation2] sm:$0xff]  ;;  %v605_v47 = vld [vmem:[#allocation2 + $0x30] sm:$0xff] }
 0x10e   : > { %v616_v25 = vld [vmem:[#allocation2 + $0x38] sm:$0xff]  ;;  %v627_v46 = vadd.f32 %v939_v18, %v607_v43  ;;  %v626_v48 = vadd.f32 %v939_v18, %v606_v45  ;;  %v625_v49 = vadd.f32 %v939_v18, %v605_v47  ;;  %v641_v50 = vld [vmem:[%s1114_s6] sm:$0xff] }
 0x10f   : > { %v620_v17 = vld [vmem:[#allocation2 + $0x28] sm:$0xff]  ;;  %v636_v28 = vadd.f32 %v939_v18, %v616_v25 }
 0x110   : > { %v640_v21 = vadd.f32 %v939_v18, %v620_v17 }
 0x112   : > { %642 = vmatpush.msra.mxu0 %v640_v21 }
 0x114   : > { %643 = vmatpush.msra.mxu0 %v639_v22 }
 0x116   : > { %644 = vmatpush.msra.mxu0 %v638_v24 }
 0x118   : > { %645 = vmatpush.msra.mxu0 %v637_v26 }
 0x11a   : > { %646 = vmatpush.msra.mxu0 %v636_v28 }
 0x11c   : > { %647 = vmatpush.msra.mxu0 %v635_v30 }
 0x11e   : > { %648 = vmatpush.msra.mxu0 %v634_v32 }
 0x120   : > { %649 = vmatpush.msra.mxu0 %v633_v34 }
 0x122   : > { %650 = vmatpush.msra.mxu0 %v632_v36 }
 0x124   : > { %651 = vmatpush.msra.mxu0 %v631_v38 }
 0x126   : > { %652 = vmatpush.msra.mxu0 %v630_v40 }
 0x128   : > { %653 = vmatpush.msra.mxu0 %v629_v42 }
 0x12a   : > { %654 = vmatpush.msra.mxu0 %v628_v44 }
 0x12c   : > { %655 = vmatpush.msra.mxu0 %v627_v46 }
 0x12e   : > { %656 = vmatpush.msra.mxu0 %v626_v48 }
 0x130   : > { %657 = vmatpush.msra.mxu0 %v625_v49 }
 0x131   : > { %658 = vmatmul.f32.vlgmr.msra.gmra.mxu0 %v641_v50 }
 0x1ae   : > { %v659_v51 = vpop.f32.mrf.mxu0 }
 0x1af   : > { %662 = vst [vmem:[%s1119_s8] sm:$0xff] %v659_v51 }
 0x1b0 PF: > { %s14_s21 = sadd.s32 1, %s994_s21   ;;  %s1172_s15 = smov %s974_s16 }
 0x1b1   : > { %p11_p0 = scmp.ge.s32.totalorder %s14_s21, 6   ;;  %s1173_s16 = smov %s1073_s28 }
 0x1b2   : > { %s1174_s17 = smov %s986_s19  ;;  %s1175_s18 = smov %s990_s20 }
 0x1b3   : > { %s1176_s19 = smov %s1179_s22  ;;  %s1177_s20 = smov %s1183_s23 }
 0x1b4   :  { %13 = sbr.rel (!%p11_p0) target bundleno = 4 (0x4), region = 126 }

</bundles_post_ra>
